<compile_context>
chip_gen: v5e
topology: v5e:2x2
jax: 0.10.0
libtpu: 0.0.40
codegen_flags: <defaults>
</compile_context>

<pallas_src>
import functools

import jax
import jax.numpy as jnp
from jax.experimental import pallas as pl
from jax.experimental.pallas import tpu as pltpu


def dan_kernel(ids_ref, len_ref, lab_ref,
               emb_ref, w1_ref, b1_ref, w2_ref, b2_ref, w3_ref, b3_ref,
               wfc_ref, bfc_ref,
               pred_ref, bce_ref, *, num_valid):
    BB, S = ids_ref.shape
    V = emb_ref.shape[0]

    # ---- Fused embedding bag: counts[b, v] = sum_s (ids[b, s] == v) --------
    # TODO(synk): for large vocabularies replace the in-VMEM one-hot with a
    # PrefetchScalarGridSpec + pl.Element row-gather on the embedding table.
    ids = ids_ref[...]                                               # (BB, S) i32
    tok = jax.lax.broadcasted_iota(jnp.int32, (BB, V, S), 1)
    one_hot = (ids[:, None, :] == tok).astype(jnp.float32)          # (BB, V, S)
    counts = jnp.sum(one_hot, axis=-1)                              # (BB, V)
    # Bag-of-words sum of embeddings == counts @ emb_table.
    x = jnp.dot(counts, emb_ref[...],
                preferred_element_type=jnp.float32)                 # (BB, E)

    # Average word embedding: x * (1 / lengths)  (EUP reciprocal slot).
    x = x * pl.reciprocal(len_ref[...], approx=True)

    # ---- hidden: 3 x (Linear + Tanh); bf16 MXU inputs, f32 accum/elementwise
    h = jnp.tanh(jnp.dot(x.astype(jnp.bfloat16), w1_ref[...],
                         preferred_element_type=jnp.float32) + b1_ref[...])
    h = jnp.tanh(jnp.dot(h.astype(jnp.bfloat16), w2_ref[...],
                         preferred_element_type=jnp.float32) + b2_ref[...])
    h = jnp.tanh(jnp.dot(h.astype(jnp.bfloat16), w3_ref[...],
                         preferred_element_type=jnp.float32) + b3_ref[...])

    # ---- fc: Linear(H, 1) as VPU multiply + lane reduce (keeps MXU free) ---
    logit = jnp.sum(h * wfc_ref[...], axis=-1, keepdims=True) + bfc_ref[...]
    p = 1.0 / (1.0 + jnp.exp(-logit))                               # (BB, 1)

    # predicted_labels = (sigmoid(logit) > 0.5).float()
    pred_ref[...] = (p > 0.5).astype(jnp.float32)

    # Per-row BCE (PyTorch BCELoss clamps log at -100); padded rows masked out.
    row = pl.program_id(0) * BB + jax.lax.broadcasted_iota(jnp.int32, (BB, 1), 0)
    valid = (row < num_valid).astype(jnp.float32)
    y = lab_ref[...]
    log_p = jnp.maximum(jnp.log(p), -100.0)
    log_1mp = jnp.maximum(jnp.log(1.0 - p), -100.0)
    bce_ref[...] = valid * -(y * log_p + (1.0 - y) * log_1mp)


def _round_up(n, m):
    return ((n + m - 1) // m) * m


def prepare_params(params, hidden_pad):
    """Zero-pad the MLP to a lane-dense hidden width; cast matmul weights bf16."""
    w1, b1, w2, b2, w3, b3, wfc, bfc = params
    HP = hidden_pad

    def pad_cols(a):
        return jnp.pad(a, ((0, 0), (0, HP - a.shape[1])))

    def pad_both(a):
        return jnp.pad(a, ((0, HP - a.shape[0]), (0, HP - a.shape[1])))

    w1p = pad_cols(w1).astype(jnp.bfloat16)                      # (E, HP)
    w2p = pad_both(w2).astype(jnp.bfloat16)                      # (HP, HP)
    w3p = pad_both(w3).astype(jnp.bfloat16)                      # (HP, HP)
    b1p, b2p, b3p = pad_cols(b1), pad_cols(b2), pad_cols(b3)     # (1, HP) f32
    wfc_row = jnp.pad(wfc.T, ((0, 0), (0, HP - wfc.shape[0])))   # (1, HP) f32
    return w1p, b1p, w2p, b2p, w3p, b3p, wfc_row, bfc


def dan_forward(emb_table, input_ids, labels, lengths, padded_params):
    w1, b1, w2, b2, w3, b3, wfc_row, bfc = padded_params
    B, S = input_ids.shape
    V, E = emb_table.shape
    HP = w1.shape[1]

    # Batch tiling: block of rows per grid step (>= 8 f32 sublanes).
    BB = 128 if B > 128 else _round_up(max(B, 8), 8)
    B_pad = _round_up(max(B, BB), BB)
    nb = B_pad // BB

    def pad_rows(a, value):
        return jnp.pad(a, ((0, B_pad - a.shape[0]), (0, 0)), constant_values=value)

    ids_p = pad_rows(input_ids.astype(jnp.int32), 0)
    len_p = pad_rows(lengths.astype(jnp.float32).reshape(B, 1), 1.0)
    lab_p = pad_rows(labels.astype(jnp.float32).reshape(B, 1), 0.0)

    row_blk = lambda i: (i, 0)     # tiled along the batch axis
    resident = lambda i: (0, 0)    # weights: same block every step (stay in VMEM)

    kernel = functools.partial(dan_kernel, num_valid=B)

    pred_pad, bce_rows = pl.pallas_call(
        kernel,
        out_shape=(jax.ShapeDtypeStruct((B_pad, 1), jnp.float32),
                   jax.ShapeDtypeStruct((B_pad, 1), jnp.float32)),
        grid_spec=pltpu.PrefetchScalarGridSpec(
            num_scalar_prefetch=0,
            grid=(nb,),
            in_specs=[
                pl.BlockSpec((BB, S), row_blk),     # token ids
                pl.BlockSpec((BB, 1), row_blk),     # lengths
                pl.BlockSpec((BB, 1), row_blk),     # labels
                pl.BlockSpec((V, E), resident),     # embedding table (f32)
                pl.BlockSpec((E, HP), resident),    # w1 (bf16)
                pl.BlockSpec((1, HP), resident),    # b1 (f32)
                pl.BlockSpec((HP, HP), resident),   # w2 (bf16)
                pl.BlockSpec((1, HP), resident),    # b2 (f32)
                pl.BlockSpec((HP, HP), resident),   # w3 (bf16)
                pl.BlockSpec((1, HP), resident),    # b3 (f32)
                pl.BlockSpec((1, HP), resident),    # fc weight as a row (f32)
                pl.BlockSpec((1, 1), resident),     # fc bias
            ],
            out_specs=(pl.BlockSpec((BB, 1), row_blk),
                       pl.BlockSpec((BB, 1), row_blk)),
        ),
        compiler_params=pltpu.CompilerParams(
            dimension_semantics=("parallel",)),
    )(ids_p, len_p, lab_p, emb_table, w1, b1, w2, b2, w3, b3, wfc_row, bfc)

    loss = jnp.sum(bce_rows) / B          # BCELoss mean over the real batch
    predicted_labels = pred_pad[:B]       # (B, 1)
    return loss, predicted_labels


def init_params(key, vocab_size, emb_size, hidden=300):
    ks = jax.random.split(key, 9)
    scale = 0.1
    emb_table = scale * jax.random.normal(ks[0], (vocab_size, emb_size), jnp.float32)
    w1 = scale * jax.random.normal(ks[1], (emb_size, hidden), jnp.float32)
    b1 = scale * jax.random.normal(ks[2], (1, hidden), jnp.float32)
    w2 = scale * jax.random.normal(ks[3], (hidden, hidden), jnp.float32)
    b2 = scale * jax.random.normal(ks[4], (1, hidden), jnp.float32)
    w3 = scale * jax.random.normal(ks[5], (hidden, hidden), jnp.float32)
    b3 = scale * jax.random.normal(ks[6], (1, hidden), jnp.float32)
    wfc = scale * jax.random.normal(ks[7], (hidden, 1), jnp.float32)
    bfc = scale * jax.random.normal(ks[8], (1, 1), jnp.float32)
    return emb_table, (w1, b1, w2, b2, w3, b3, wfc, bfc)


if __name__ == "__main__":
    key = jax.random.PRNGKey(0)
    k_param, k_ids, k_lab = jax.random.split(key, 3)

    VOCAB_SIZE = 50
    EMB_SIZE = 32
    HIDDEN = 300
    BATCH = 2
    SEQ = 8

    emb_table, params = init_params(k_param, VOCAB_SIZE, EMB_SIZE, HIDDEN)
    padded_params = prepare_params(params, _round_up(HIDDEN, 128))

    input_ids = jax.random.randint(k_ids, (BATCH, SEQ), 0, VOCAB_SIZE, jnp.int32)
    labels = jax.random.bernoulli(k_lab, 0.5, (BATCH,)).astype(jnp.float32)
    lengths = jnp.array([[8.0], [5.0]], dtype=jnp.float32)  # (B, 1) token lengths

    loss, predicted_labels = dan_forward(emb_table, input_ids, labels, lengths,
                                         padded_params)
    jax.block_until_ready((loss, predicted_labels))
    print("KERNEL_OK")
</pallas_src>

<mosaic_0001>
module attributes {stable_mosaic.version = 11 : i64} {
  func.func @dan_kernel(%arg0: i32, %arg1: memref<8x8xi32, #tpu.memory_space<vmem>>, %arg2: memref<8x1xf32, #tpu.memory_space<vmem>>, %arg3: memref<8x1xf32, #tpu.memory_space<vmem>>, %arg4: memref<50x32xf32, #tpu.memory_space<vmem>>, %arg5: memref<32x384xbf16, #tpu.memory_space<vmem>>, %arg6: memref<1x384xf32, #tpu.memory_space<vmem>>, %arg7: memref<384x384xbf16, #tpu.memory_space<vmem>>, %arg8: memref<1x384xf32, #tpu.memory_space<vmem>>, %arg9: memref<384x384xbf16, #tpu.memory_space<vmem>>, %arg10: memref<1x384xf32, #tpu.memory_space<vmem>>, %arg11: memref<1x384xf32, #tpu.memory_space<vmem>>, %arg12: memref<1x1xf32, #tpu.memory_space<vmem>>, %arg13: memref<8x1xf32, #tpu.memory_space<vmem>>, %arg14: memref<8x1xf32, #tpu.memory_space<vmem>>) attributes {dimension_semantics = [#tpu.dimension_semantics<parallel>], iteration_bounds = array<i64: 1>, scalar_prefetch = 0 : i64, scratch_operands = 0 : i64, tpu.core_type = #tpu.core_type<tc>, window_params = [{transform_indices = @transform_0, window_bounds = array<i64: 8, 8>}, {transform_indices = @transform_1, window_bounds = array<i64: 8, 1>}, {transform_indices = @transform_2, window_bounds = array<i64: 8, 1>}, {pipeline_mode = #tpu.pipeline_mode<synchronous>, transform_indices = @transform_3, window_bounds = array<i64: 50, 32>}, {pipeline_mode = #tpu.pipeline_mode<synchronous>, transform_indices = @transform_4, window_bounds = array<i64: 32, 384>}, {pipeline_mode = #tpu.pipeline_mode<synchronous>, transform_indices = @transform_5, window_bounds = array<i64: 1, 384>}, {pipeline_mode = #tpu.pipeline_mode<synchronous>, transform_indices = @transform_6, window_bounds = array<i64: 384, 384>}, {pipeline_mode = #tpu.pipeline_mode<synchronous>, transform_indices = @transform_7, window_bounds = array<i64: 1, 384>}, {pipeline_mode = #tpu.pipeline_mode<synchronous>, transform_indices = @transform_8, window_bounds = array<i64: 384, 384>}, {pipeline_mode = #tpu.pipeline_mode<synchronous>, transform_indices = @transform_9, window_bounds = array<i64: 1, 384>}, {pipeline_mode = #tpu.pipeline_mode<synchronous>, transform_indices = @transform_10, window_bounds = array<i64: 1, 384>}, {pipeline_mode = #tpu.pipeline_mode<synchronous>, transform_indices = @transform_11, window_bounds = array<i64: 1, 1>}, {transform_indices = @transform_12, window_bounds = array<i64: 8, 1>}, {transform_indices = @transform_13, window_bounds = array<i64: 8, 1>}]} {
    %c0 = arith.constant 0 : index
    %c0_0 = arith.constant 0 : index
    %0 = vector.load %arg1[%c0, %c0_0] : memref<8x8xi32, #tpu.memory_space<vmem>>, vector<8x8xi32>
    %1 = tpu.iota {dimensions = array<i32: 1>} : vector<8x50x8xi32>
    %2 = vector.shape_cast %0 : vector<8x8xi32> to vector<8x1x8xi32>
    %3 = vector.broadcast %2 : vector<8x1x8xi32> to vector<8x50x8xi32>
    %4 = arith.cmpi eq, %3, %1 : vector<8x50x8xi32>
    %5 = arith.extui %4 : vector<8x50x8xi1> to vector<8x50x8xi32>
    %6 = arith.sitofp %5 : vector<8x50x8xi32> to vector<8x50x8xf32>
    %cst = arith.constant dense<0.000000e+00> : vector<8x50xf32>
    %7 = vector.multi_reduction <add>, %6, %cst [2] : vector<8x50x8xf32> to vector<8x50xf32>
    %c0_1 = arith.constant 0 : index
    %c0_2 = arith.constant 0 : index
    %8 = vector.load %arg4[%c0_1, %c0_2] : memref<50x32xf32, #tpu.memory_space<vmem>>, vector<50x32xf32>
    %cst_3 = arith.constant dense<0.000000e+00> : vector<8x32xf32>
    %9 = tpu.matmul %7, %8, %cst_3 {dimension_numbers = #tpu.dot_dimension_numbers<[1], [0], [0], [1], [0, 0, 1, 1], [], []>} : vector<8x50xf32>, vector<50x32xf32>, vector<8x32xf32> -> vector<8x32xf32>
    %c0_4 = arith.constant 0 : index
    %c0_5 = arith.constant 0 : index
    %10 = vector.load %arg2[%c0_4, %c0_5] : memref<8x1xf32, #tpu.memory_space<vmem>>, vector<8x1xf32>
    %11 = tpu.reciprocal %10 {approx = true} : vector<8x1xf32> -> vector<8x1xf32>
    %12 = vector.broadcast %11 : vector<8x1xf32> to vector<8x32xf32>
    %13 = arith.mulf %9, %12 : vector<8x32xf32>
    %14 = arith.truncf %13 : vector<8x32xf32> to vector<8x32xbf16>
    %c0_6 = arith.constant 0 : index
    %c0_7 = arith.constant 0 : index
    %15 = vector.load %arg5[%c0_6, %c0_7] : memref<32x384xbf16, #tpu.memory_space<vmem>>, vector<32x384xbf16>
    %cst_8 = arith.constant dense<0.000000e+00> : vector<8x384xf32>
    %16 = tpu.matmul %14, %15, %cst_8 {dimension_numbers = #tpu.dot_dimension_numbers<[1], [0], [0], [1], [0, 0, 1, 1], [], []>} : vector<8x32xbf16>, vector<32x384xbf16>, vector<8x384xf32> -> vector<8x384xf32>
    %c0_9 = arith.constant 0 : index
    %c0_10 = arith.constant 0 : index
    %17 = vector.load %arg6[%c0_9, %c0_10] : memref<1x384xf32, #tpu.memory_space<vmem>>, vector<1x384xf32>
    %18 = vector.broadcast %17 : vector<1x384xf32> to vector<8x384xf32>
    %19 = arith.addf %16, %18 : vector<8x384xf32>
    %20 = math.tanh %19 : vector<8x384xf32>
    %21 = arith.truncf %20 : vector<8x384xf32> to vector<8x384xbf16>
    %c0_11 = arith.constant 0 : index
    %c0_12 = arith.constant 0 : index
    %22 = vector.load %arg7[%c0_11, %c0_12] : memref<384x384xbf16, #tpu.memory_space<vmem>>, vector<384x384xbf16>
    %cst_13 = arith.constant dense<0.000000e+00> : vector<8x384xf32>
    %23 = tpu.matmul %21, %22, %cst_13 {dimension_numbers = #tpu.dot_dimension_numbers<[1], [0], [0], [1], [0, 0, 1, 1], [], []>} : vector<8x384xbf16>, vector<384x384xbf16>, vector<8x384xf32> -> vector<8x384xf32>
    %c0_14 = arith.constant 0 : index
    %c0_15 = arith.constant 0 : index
    %24 = vector.load %arg8[%c0_14, %c0_15] : memref<1x384xf32, #tpu.memory_space<vmem>>, vector<1x384xf32>
    %25 = vector.broadcast %24 : vector<1x384xf32> to vector<8x384xf32>
    %26 = arith.addf %23, %25 : vector<8x384xf32>
    %27 = math.tanh %26 : vector<8x384xf32>
    %28 = arith.truncf %27 : vector<8x384xf32> to vector<8x384xbf16>
    %c0_16 = arith.constant 0 : index
    %c0_17 = arith.constant 0 : index
    %29 = vector.load %arg9[%c0_16, %c0_17] : memref<384x384xbf16, #tpu.memory_space<vmem>>, vector<384x384xbf16>
    %cst_18 = arith.constant dense<0.000000e+00> : vector<8x384xf32>
    %30 = tpu.matmul %28, %29, %cst_18 {dimension_numbers = #tpu.dot_dimension_numbers<[1], [0], [0], [1], [0, 0, 1, 1], [], []>} : vector<8x384xbf16>, vector<384x384xbf16>, vector<8x384xf32> -> vector<8x384xf32>
    %c0_19 = arith.constant 0 : index
    %c0_20 = arith.constant 0 : index
    %31 = vector.load %arg10[%c0_19, %c0_20] : memref<1x384xf32, #tpu.memory_space<vmem>>, vector<1x384xf32>
    %32 = vector.broadcast %31 : vector<1x384xf32> to vector<8x384xf32>
    %33 = arith.addf %30, %32 : vector<8x384xf32>
    %34 = math.tanh %33 : vector<8x384xf32>
    %c0_21 = arith.constant 0 : index
    %c0_22 = arith.constant 0 : index
    %35 = vector.load %arg11[%c0_21, %c0_22] : memref<1x384xf32, #tpu.memory_space<vmem>>, vector<1x384xf32>
    %36 = vector.broadcast %35 : vector<1x384xf32> to vector<8x384xf32>
    %37 = arith.mulf %34, %36 : vector<8x384xf32>
    %cst_23 = arith.constant dense<0.000000e+00> : vector<8xf32>
    %38 = vector.multi_reduction <add>, %37, %cst_23 [1] : vector<8x384xf32> to vector<8xf32>
    %39 = vector.shape_cast %38 : vector<8xf32> to vector<8x1xf32>
    %c0_24 = arith.constant 0 : index
    %c0_25 = arith.constant 0 : index
    %40 = vector.load %arg12[%c0_24, %c0_25] : memref<1x1xf32, #tpu.memory_space<vmem>>, vector<1x1xf32>
    %41 = vector.broadcast %40 : vector<1x1xf32> to vector<8x1xf32>
    %42 = arith.addf %39, %41 : vector<8x1xf32>
    %cst_26 = arith.constant 0.000000e+00 : f32
    %43 = vector.broadcast %cst_26 : f32 to vector<8x1xf32>
    %44 = arith.subf %43, %42 : vector<8x1xf32>
    %45 = math.exp %44 : vector<8x1xf32>
    %cst_27 = arith.constant 1.000000e+00 : f32
    %46 = vector.broadcast %cst_27 : f32 to vector<8x1xf32>
    %47 = arith.addf %46, %45 : vector<8x1xf32>
    %cst_28 = arith.constant 1.000000e+00 : f32
    %48 = vector.broadcast %cst_28 : f32 to vector<8x1xf32>
    %49 = arith.divf %48, %47 : vector<8x1xf32>
    %cst_29 = arith.constant 5.000000e-01 : f32
    %50 = vector.broadcast %cst_29 : f32 to vector<8x1xf32>
    %51 = arith.cmpf ogt, %49, %50 : vector<8x1xf32>
    %52 = arith.extui %51 : vector<8x1xi1> to vector<8x1xi32>
    %53 = arith.sitofp %52 : vector<8x1xi32> to vector<8x1xf32>
    %c0_30 = arith.constant 0 : index
    %c0_31 = arith.constant 0 : index
    %54 = vector.load %arg13[%c0_30, %c0_31] : memref<8x1xf32, #tpu.memory_space<vmem>>, vector<8x1xf32>
    tpu.vector_store %arg13[%c0_30, %c0_31], %53 {strides = array<i32>} : memref<8x1xf32, #tpu.memory_space<vmem>>, vector<8x1xf32>,
    %c8_i32 = arith.constant 8 : i32
    %55 = arith.muli %arg0, %c8_i32 : i32
    %56 = tpu.iota {dimensions = array<i32: 0>} : vector<8x1xi32>
    %57 = vector.broadcast %55 : i32 to vector<8x1xi32>
    %58 = arith.addi %57, %56 : vector<8x1xi32>
    %c2_i32 = arith.constant 2 : i32
    %59 = vector.broadcast %c2_i32 : i32 to vector<8x1xi32>
    %60 = arith.cmpi slt, %58, %59 : vector<8x1xi32>
    %61 = arith.extui %60 : vector<8x1xi1> to vector<8x1xi32>
    %62 = arith.sitofp %61 : vector<8x1xi32> to vector<8x1xf32>
    %c0_32 = arith.constant 0 : index
    %c0_33 = arith.constant 0 : index
    %63 = vector.load %arg3[%c0_32, %c0_33] : memref<8x1xf32, #tpu.memory_space<vmem>>, vector<8x1xf32>
    %64 = math.log %49 : vector<8x1xf32>
    %cst_34 = arith.constant -1.000000e+02 : f32
    %65 = vector.broadcast %cst_34 : f32 to vector<8x1xf32>
    %66 = arith.maximumf %64, %65 : vector<8x1xf32>
    %cst_35 = arith.constant 1.000000e+00 : f32
    %67 = vector.broadcast %cst_35 : f32 to vector<8x1xf32>
    %68 = arith.subf %67, %49 : vector<8x1xf32>
    %69 = math.log %68 : vector<8x1xf32>
    %cst_36 = arith.constant -1.000000e+02 : f32
    %70 = vector.broadcast %cst_36 : f32 to vector<8x1xf32>
    %71 = arith.maximumf %69, %70 : vector<8x1xf32>
    %72 = arith.mulf %63, %66 : vector<8x1xf32>
    %cst_37 = arith.constant 1.000000e+00 : f32
    %73 = vector.broadcast %cst_37 : f32 to vector<8x1xf32>
    %74 = arith.subf %73, %63 : vector<8x1xf32>
    %75 = arith.mulf %74, %71 : vector<8x1xf32>
    %76 = arith.addf %72, %75 : vector<8x1xf32>
    %cst_38 = arith.constant 0.000000e+00 : f32
    %77 = vector.broadcast %cst_38 : f32 to vector<8x1xf32>
    %78 = arith.subf %77, %76 : vector<8x1xf32>
    %79 = arith.mulf %62, %78 : vector<8x1xf32>
    %c0_39 = arith.constant 0 : index
    %c0_40 = arith.constant 0 : index
    %80 = vector.load %arg14[%c0_39, %c0_40] : memref<8x1xf32, #tpu.memory_space<vmem>>, vector<8x1xf32>
    tpu.vector_store %arg14[%c0_39, %c0_40], %79 {strides = array<i32>} : memref<8x1xf32, #tpu.memory_space<vmem>>, vector<8x1xf32>,
    return
  }
  func.func @transform_0(%arg0: i32) -> (i32, i32) {
    %c0_i32 = arith.constant 0 : i32
    %c0_i32_0 = arith.constant 0 : i32
    return %arg0, %c0_i32 : i32, i32
  }
  func.func @transform_1(%arg0: i32) -> (i32, i32) {
    %c0_i32 = arith.constant 0 : i32
    %c0_i32_0 = arith.constant 0 : i32
    return %arg0, %c0_i32 : i32, i32
  }
  func.func @transform_2(%arg0: i32) -> (i32, i32) {
    %c0_i32 = arith.constant 0 : i32
    %c0_i32_0 = arith.constant 0 : i32
    return %arg0, %c0_i32 : i32, i32
  }
  func.func @transform_3(%arg0: i32) -> (i32, i32) {
    %c0_i32 = arith.constant 0 : i32
    %c0_i32_0 = arith.constant 0 : i32
    %c0_i32_1 = arith.constant 0 : i32
    return %c0_i32, %c0_i32_0 : i32, i32
  }
  func.func @transform_4(%arg0: i32) -> (i32, i32) {
    %c0_i32 = arith.constant 0 : i32
    %c0_i32_0 = arith.constant 0 : i32
    %c0_i32_1 = arith.constant 0 : i32
    return %c0_i32, %c0_i32_0 : i32, i32
  }
  func.func @transform_5(%arg0: i32) -> (i32, i32) {
    %c0_i32 = arith.constant 0 : i32
    %c0_i32_0 = arith.constant 0 : i32
    %c0_i32_1 = arith.constant 0 : i32
    return %c0_i32, %c0_i32_0 : i32, i32
  }
  func.func @transform_6(%arg0: i32) -> (i32, i32) {
    %c0_i32 = arith.constant 0 : i32
    %c0_i32_0 = arith.constant 0 : i32
    %c0_i32_1 = arith.constant 0 : i32
    return %c0_i32, %c0_i32_0 : i32, i32
  }
  func.func @transform_7(%arg0: i32) -> (i32, i32) {
    %c0_i32 = arith.constant 0 : i32
    %c0_i32_0 = arith.constant 0 : i32
    %c0_i32_1 = arith.constant 0 : i32
    return %c0_i32, %c0_i32_0 : i32, i32
  }
  func.func @transform_8(%arg0: i32) -> (i32, i32) {
    %c0_i32 = arith.constant 0 : i32
    %c0_i32_0 = arith.constant 0 : i32
    %c0_i32_1 = arith.constant 0 : i32
    return %c0_i32, %c0_i32_0 : i32, i32
  }
  func.func @transform_9(%arg0: i32) -> (i32, i32) {
    %c0_i32 = arith.constant 0 : i32
    %c0_i32_0 = arith.constant 0 : i32
    %c0_i32_1 = arith.constant 0 : i32
    return %c0_i32, %c0_i32_0 : i32, i32
  }
  func.func @transform_10(%arg0: i32) -> (i32, i32) {
    %c0_i32 = arith.constant 0 : i32
    %c0_i32_0 = arith.constant 0 : i32
    %c0_i32_1 = arith.constant 0 : i32
    return %c0_i32, %c0_i32_0 : i32, i32
  }
  func.func @transform_11(%arg0: i32) -> (i32, i32) {
    %c0_i32 = arith.constant 0 : i32
    %c0_i32_0 = arith.constant 0 : i32
    %c0_i32_1 = arith.constant 0 : i32
    return %c0_i32, %c0_i32_0 : i32, i32
  }
  func.func @transform_12(%arg0: i32) -> (i32, i32) {
    %c0_i32 = arith.constant 0 : i32
    %c0_i32_0 = arith.constant 0 : i32
    return %arg0, %c0_i32 : i32, i32
  }
  func.func @transform_13(%arg0: i32) -> (i32, i32) {
    %c0_i32 = arith.constant 0 : i32
    %c0_i32_0 = arith.constant 0 : i32
    return %arg0, %c0_i32 : i32, i32
  }
}

</mosaic_0001>

<bundles_post_ra>
// kernel: tpu_custom_call.1
= control target key start
LH: loop header
LB: loop body
LE: loop exit
PB: predicated region body
PF: predicated region fallthrough
CT: control target
= control target key end

     0   :  { %s3599_s0 = inlined_call_operand.vmem [shape: s32[8,8], index: 0, kind: input, shape index: {}]   ;;  %s3600_s1 = inlined_call_operand.vmem [shape: f32[8,1], index: 1, kind: input, shape index: {}]   ;;  %s3601_s2 = inlined_call_operand.vmem [shape: f32[8,1], index: 2, kind: input, shape index: {}]   ;;  %s3602_s3 = inlined_call_operand.vmem [shape: f32[50,32], index: 3, kind: input, shape index: {}]   ;;  %s3603_s4 = inlined_call_operand.vmem [shape: bf16[32,384], index: 4, kind: input, shape index: {}]   ;;  %s3604_s5 = inlined_call_operand.vmem [shape: f32[1,384], index: 5, kind: input, shape index: {}]   ;;  %s3605_s6 = inlined_call_operand.hbm [shape: bf16[384,384], index: 6, kind: input, shape index: {}]   ;;  %s3606_s7 = inlined_call_operand.vmem [shape: f32[1,384], index: 7, kind: input, shape index: {}]   ;;  %s3607_s8 = inlined_call_operand.hbm [shape: bf16[384,384], index: 8, kind: input, shape index: {}]   ;;  %s3608_s9 = inlined_call_operand.vmem [shape: f32[1,384], index: 9, kind: input, shape index: {}]   ;;  %s3609_s10 = inlined_call_operand.vmem [shape: f32[1,384], index: 10, kind: input, shape index: {}]   ;;  %s3610_s11 = inlined_call_operand.<no memory space> [shape: f32[1,1], index: 11, kind: input, shape index: {}]   ;;  %s3611_s12 = inlined_call_operand.vmem [shape: f32[8,1], index: 12, kind: output, shape index: {0}]   ;;  %s3612_s13 = inlined_call_operand.vmem [shape: f32[8,1], index: 13, kind: output, shape index: {1}]  }
   0x1   :  { %v19_v0 = vstv %s3610_s11 }
   0x2   :  { %20 = vst [vmem:[#allocation2] sm:$0x1] %v19_v0 }
   0x3   :  { %21 = vsyncpa [#allocation4], 0  ;;  %s39_s29 = sshll.u32 %s3605_s6, 4  ;;  %s40_s29 = int_to_ptr.hbm [resolvable:$true] %s39_s29 }
   0x4   :  { %22 = vsyncpa [#allocation6], 0  ;;  %s2964_s30 = smov [#allocation3]   ;;  %s54_s17 = sshll.u32 %s3607_s8, 4  ;;  %s55_s17 = int_to_ptr.hbm [resolvable:$true] %s54_s17 }
   0x5   :  { %s41_s14 = sshll.u32 %s2964_s30, 4  ;;  %s2965_s18 = smov 192   ;;  %s42_s14 = int_to_ptr.vmem [resolvable:$true] %s41_s14 }
   0x6   :  { %s2966_s19 = smov 12   ;;  %s2967_s11 = smov [#allocation5]  }
   0x7   :  { %47 = dma.hbm_to_vmem [thread:$0]  %s40_s29, 9216, %s42_s14, [#allocation4], %s2965_s18, %s2965_s18, %s2966_s19  }
   0x8   :  { %s56_s20 = sshll.u32 %s2967_s11, 4  ;;  %s57_s20 = int_to_ptr.vmem [resolvable:$true] %s56_s20 }
   0x9   :  { %62 = dma.hbm_to_vmem [thread:$0]  %s55_s17, 9216, %s57_s20, [#allocation6], %s2965_s18, %s2965_s18, %s2966_s19  }
   0xa   :  { %2960 = dma.done.wait [#allocation4], 9216  }
   0xb   :  { %2961 = vsyncadd [#allocation4], 4294958080 }
   0xc   :  { %2962 = dma.done.wait [#allocation6], 9216  }
   0xd   :  { %2963 = vsyncadd [#allocation6], 4294958080  ;;  %v79_v1 = vlaneseq  ;;  %v3058_v4 = vld [vmem:[%s3599_s0] sm:$0xff]  ;;  %vm270_vm0 = vcmask 64512   ;;  %v2968_v9 = vmov 0.0  }
   0xe   :  { %v3061_v5 = vperm.slane %v3058_v4, 0  ;;  %v87_v6 = vrot.slane %v3058_v4, 1  ;;  %v88_v12 = vrot.slane %v3058_v4, 2  ;;  %v89_v25 = vrot.slane %v3058_v4, 3 }
   0xf   :  { %v3050_v2 = vshrl.u32 %v79_v1, 7  ;;  %v90_v40 = vrot.slane %v3058_v4, 4  ;;  %v91_v61 = vrot.slane %v3058_v4, 5 }
  0x10   :  { %v3071_v8 = vperm.slane %v87_v6, 0  ;;  %v3090_v19 = vperm.slane %v88_v12, 0  ;;  %v3108_v28 = vperm.slane %v89_v25, 0 }
  0x11   :  { %v3053_v3 = vadd.s32 16, %v3050_v2  ;;  %v3065_v7 = vadd.s32 8, %v3050_v2  ;;  %vm102_vm2 = vcmp.eq.s32.totalorder %v3061_v5, %v3050_v2  ;;  %v3093_v20 = vadd.s32 24, %v3050_v2 }
  0x12   :  { %v2062_v11 = vsel %vm102_vm2, 1.0, %v2968_v9  ;;  %vm109_vm3 = vcmp.eq.s32.totalorder %v3071_v8, %v3050_v2  ;;  %vm116_vm7 = vcmp.eq.s32.totalorder %v3090_v19, %v3050_v2  ;;  %vm123_vm11 = vcmp.eq.s32.totalorder %v3108_v28, %v3050_v2 }
  0x13   :  { %vm104_vm1 = vcmp.eq.s32.totalorder %v3061_v5, %v3053_v3  ;;  %v271_v14 = vsel %vm270_vm0, %v2062_v11, 0.0  ;;  %vm103_vm4 = vcmp.eq.s32.totalorder %v3061_v5, %v3065_v7  ;;  %v2069_v15 = vsel %vm109_vm3, 1.0, %v2968_v9 }
  0x14   :  { %v2064_v10 = vsel %vm104_vm1, 1.0, %v2968_v9  ;;  %272 = vadd.xlane.f32.xlu0 %v271_v14  ;;  %vm111_vm5 = vcmp.eq.s32.totalorder %v3071_v8, %v3053_v3  ;;  %v293_v16 = vsel %vm270_vm0, %v2069_v15, 0.0  ;;  %vm110_vm6 = vcmp.eq.s32.totalorder %v3071_v8, %v3065_v7 }
  0x15   :  { %v277_v13 = vsel %vm270_vm0, %v2064_v10, 0.0  ;;  %294 = vadd.xlane.f32.xlu1 %v293_v16  ;;  %v2063_v17 = vsel %vm103_vm4, 1.0, %v2968_v9  ;;  %v2071_v18 = vsel %vm111_vm5, 1.0, %v2968_v9  ;;  %v2070_v21 = vsel %vm110_vm6, 1.0, %v2968_v9 }
  0x16   :  { %278 = vadd.xlane.f32.xlu2 %v277_v13  ;;  %v274_v22 = vsel %vm270_vm0, %v2063_v17, 0.0  ;;  %v299_v23 = vsel %vm270_vm0, %v2071_v18, 0.0  ;;  %v296_v24 = vsel %vm270_vm0, %v2070_v21, 0.0  ;;  %vm105_vm8 = vcmp.eq.s32.totalorder %v3061_v5, %v3093_v20 }
  0x17   :  { %vm117_vm9 = vcmp.eq.s32.totalorder %v3090_v19, %v3065_v7  ;;  %v2076_v26 = vsel %vm116_vm7, 1.0, %v2968_v9  ;;  %v2065_v27 = vsel %vm105_vm8, 1.0, %v2968_v9  ;;  %vm112_vm10 = vcmp.eq.s32.totalorder %v3071_v8, %v3093_v20 }
  0x18   :  { %v2077_v29 = vsel %vm117_vm9, 1.0, %v2968_v9  ;;  %v314_v30 = vsel %vm270_vm0, %v2076_v26, 0.0  ;;  %v280_v31 = vsel %vm270_vm0, %v2065_v27, 0.0  ;;  %vm118_vm12 = vcmp.eq.s32.totalorder %v3090_v19, %v3053_v3 }
  0x19   :  { %v317_v32 = vsel %vm270_vm0, %v2077_v29, 0.0  ;;  %v2072_v33 = vsel %vm112_vm10, 1.0, %v2968_v9  ;;  %v2083_v34 = vsel %vm123_vm11, 1.0, %v2968_v9  ;;  %v3123_v35 = vadd.s32 32, %v3050_v2 }
  0x1a   :  { %v2078_v36 = vsel %vm118_vm12, 1.0, %v2968_v9  ;;  %v302_v37 = vsel %vm270_vm0, %v2072_v33, 0.0  ;;  %v335_v38 = vsel %vm270_vm0, %v2083_v34, 0.0  ;;  %vm124_vm13 = vcmp.eq.s32.totalorder %v3108_v28, %v3065_v7 }
  0x1b   :  { %v320_v39 = vsel %vm270_vm0, %v2078_v36, 0.0  ;;  %vm113_vm14 = vcmp.eq.s32.totalorder %v3071_v8, %v3123_v35  ;;  %vm106_vm15 = vcmp.eq.s32.totalorder %v3061_v5, %v3123_v35  ;;  %v2084_v41 = vsel %vm124_vm13, 1.0, %v2968_v9 }
  0x1c   :  { %275 = vadd.xlane.f32.xlu0 %v274_v22  ;;  %v2073_v42 = vsel %vm113_vm14, 1.0, %v2968_v9  ;;  %v3138_v43 = vperm.slane %v90_v40, 0  ;;  %v2066_v44 = vsel %vm106_vm15, 1.0, %v2968_v9  ;;  %v338_v45 = vsel %vm270_vm0, %v2084_v41, 0.0 }
  0x1d   :  { %297 = vadd.xlane.f32.xlu1 %v296_v24  ;;  %v305_v46 = vsel %vm270_vm0, %v2073_v42, 0.0  ;;  %v283_v47 = vsel %vm270_vm0, %v2066_v44, 0.0  ;;  %vm119_vm1 = vcmp.eq.s32.totalorder %v3090_v19, %v3093_v20  ;;  %vm125_vm3 = vcmp.eq.s32.totalorder %v3108_v28, %v3053_v3 }
  0x1e   :  { %300 = vadd.xlane.f32.xlu2 %v299_v23  ;;  %vm130_vm2 = vcmp.eq.s32.totalorder %v3138_v43, %v3050_v2  ;;  %v2079_v48 = vsel %vm119_vm1, 1.0, %v2968_v9  ;;  %v3153_v50 = vadd.s32 40, %v3050_v2  ;;  %v2085_v51 = vsel %vm125_vm3, 1.0, %v2968_v9 }
  0x1f   :  { %v2090_v49 = vsel %vm130_vm2, 1.0, %v2968_v9  ;;  %v323_v52 = vsel %vm270_vm0, %v2079_v48, 0.0  ;;  %v341_v54 = vsel %vm270_vm0, %v2085_v51, 0.0  ;;  %vm131_vm4 = vcmp.eq.s32.totalorder %v3138_v43, %v3065_v7 }
  0x20   :  { %v356_v53 = vsel %vm270_vm0, %v2090_v49, 0.0  ;;  %vm114_vm5 = vcmp.eq.s32.totalorder %v3071_v8, %v3153_v50  ;;  %vm107_vm6 = vcmp.eq.s32.totalorder %v3061_v5, %v3153_v50  ;;  %v2091_v55 = vsel %vm131_vm4, 1.0, %v2968_v9 }
  0x21   :  { %v2074_v56 = vsel %vm114_vm5, 1.0, %v2968_v9  ;;  %v2067_v57 = vsel %vm107_vm6, 1.0, %v2968_v9  ;;  %v359_v58 = vsel %vm270_vm0, %v2091_v55, 0.0  ;;  %vm120_vm7 = vcmp.eq.s32.totalorder %v3090_v19, %v3123_v35 }
  0x22   :  { %v308_v59 = vsel %vm270_vm0, %v2074_v56, 0.0  ;;  %v286_v60 = vsel %vm270_vm0, %v2067_v57, 0.0  ;;  %vm132_vm8 = vcmp.eq.s32.totalorder %v3138_v43, %v3053_v3  ;;  %vm126_vm9 = vcmp.eq.s32.totalorder %v3108_v28, %v3093_v20 }
  0x23   :  { %v2080_v62 = vsel %vm120_vm7, 1.0, %v2968_v9  ;;  %v2092_v63 = vsel %vm132_vm8, 1.0, %v2968_v9  ;;  %v3180_v0 = vperm.slane %v91_v61, 0  ;;  %v3183_v6 = vadd.s32 48, %v3050_v2 }
  0x24   :  { %315 = vadd.xlane.f32.xlu0 %v314_v30  ;;  %v2086_v10 = vsel %vm126_vm9, 1.0, %v2968_v9  ;;  %v326_v11 = vsel %vm270_vm0, %v2080_v62, 0.0  ;;  %v362_v12 = vsel %vm270_vm0, %v2092_v63, 0.0  ;;  %vm289_vm13 = vcmask 58368  }
  0x25   :  { %318 = vadd.xlane.f32.xlu1 %v317_v32  ;;  %v344_v13 = vsel %vm270_vm0, %v2086_v10, 0.0  ;;  %vm137_vm10 = vcmp.eq.s32.totalorder %v3180_v0, %v3050_v2  ;;  %vm108_vm11 = vcmp.eq.s32.totalorder %v3061_v5, %v3183_v6  ;;  %vm138_vm12 = vcmp.eq.s32.totalorder %v3180_v0, %v3065_v7 }
  0x26   :  { %281 = vadd.xlane.f32.xlu2 %v280_v31  ;;  %v2097_v14 = vsel %vm137_vm10, 1.0, %v2968_v9  ;;  %v2068_v15 = vsel %vm108_vm11, 1.0, %v2968_v9  ;;  %v2098_v16 = vsel %vm138_vm12, 1.0, %v2968_v9  ;;  %vm115_vm14 = vcmp.eq.s32.totalorder %v3071_v8, %v3183_v6 }
  0x27   :  { %v377_v17 = vsel %vm270_vm0, %v2097_v14, 0.0  ;;  %v290_v18 = vsel %vm289_vm13, %v2068_v15, 0.0  ;;  %v380_v21 = vsel %vm270_vm0, %v2098_v16, 0.0  ;;  %vm127_vm15 = vcmp.eq.s32.totalorder %v3108_v28, %v3123_v35 }
  0x28   :  { %v92_v5 = vrot.slane %v3058_v4, 6  ;;  %vm121_vm1 = vcmp.eq.s32.totalorder %v3090_v19, %v3153_v50  ;;  %v2075_v22 = vsel %vm115_vm14, 1.0, %v2968_v9  ;;  %v2087_v23 = vsel %vm127_vm15, 1.0, %v2968_v9 }
  0x29   :  { %v2081_v25 = vsel %vm121_vm1, 1.0, %v2968_v9  ;;  %v311_v8 = vsel %vm289_vm13, %v2075_v22, 0.0  ;;  %v347_v26 = vsel %vm270_vm0, %v2087_v23, 0.0  ;;  %vm133_vm2 = vcmp.eq.s32.totalorder %v3138_v43, %v3093_v20 }
  0x2a   :  { %v3210_v24 = vperm.slane %v92_v5, 0  ;;  %v329_v27 = vsel %vm270_vm0, %v2081_v25, 0.0  ;;  %vm139_vm4 = vcmp.eq.s32.totalorder %v3180_v0, %v3053_v3  ;;  %v2093_v29 = vsel %vm133_vm2, 1.0, %v2968_v9 }
  0x2b   :  { %v2099_v31 = vsel %vm139_vm4, 1.0, %v2968_v9  ;;  %v365_v32 = vsel %vm270_vm0, %v2093_v29, 0.0  ;;  %vm128_vm6 = vcmp.eq.s32.totalorder %v3108_v28, %v3153_v50  ;;  %vm122_vm7 = vcmp.eq.s32.totalorder %v3090_v19, %v3183_v6 }
  0x2c   :  { %303 = vadd.xlane.f32.xlu0 %v302_v37  ;;  %vm144_vm3 = vcmp.eq.s32.totalorder %v3210_v24, %v3050_v2  ;;  %v383_v34 = vsel %vm270_vm0, %v2099_v31, 0.0  ;;  %vm145_vm5 = vcmp.eq.s32.totalorder %v3210_v24, %v3065_v7  ;;  %v2088_v37 = vsel %vm128_vm6, 1.0, %v2968_v9 }
  0x2d   :  { %321 = vadd.xlane.f32.xlu1 %v320_v39  ;;  %v2104_v30 = vsel %vm144_vm3, 1.0, %v2968_v9  ;;  %v2105_v36 = vsel %vm145_vm5, 1.0, %v2968_v9  ;;  %v350_v40 = vsel %vm270_vm0, %v2088_v37, 0.0  ;;  %vm134_vm8 = vcmp.eq.s32.totalorder %v3138_v43, %v3123_v35 }
  0x2e   :  { %336 = vadd.xlane.f32.xlu2 %v335_v38  ;;  %v398_v33 = vsel %vm270_vm0, %v2104_v30, 0.0  ;;  %v2082_v38 = vsel %vm122_vm7, 1.0, %v2968_v9  ;;  %v401_v39 = vsel %vm270_vm0, %v2105_v36, 0.0  ;;  %vm146_vm9 = vcmp.eq.s32.totalorder %v3210_v24, %v3053_v3 }
  0x2f   :  { %v332_v41 = vsel %vm289_vm13, %v2082_v38, 0.0  ;;  %v93_v19 = vrot.slane %v3058_v4, 7  ;;  %vm140_vm10 = vcmp.eq.s32.totalorder %v3180_v0, %v3093_v20  ;;  %v2094_v42 = vsel %vm134_vm8, 1.0, %v2968_v9 }
  0x30   :  { %v2106_v44 = vsel %vm146_vm9, 1.0, %v2968_v9  ;;  %vm129_vm12 = vcmp.eq.s32.totalorder %v3108_v28, %v3183_v6  ;;  %vm135_vm15 = vcmp.eq.s32.totalorder %v3138_v43, %v3153_v50  ;;  %vm147_vm1 = vcmp.eq.s32.totalorder %v3210_v24, %v3093_v20 }
  0x31   :  { %v404_v48 = vsel %vm270_vm0, %v2106_v44, 0.0  ;;  %v2089_v51 = vsel %vm129_vm12, 1.0, %v2968_v9  ;;  %vm141_vm2 = vcmp.eq.s32.totalorder %v3180_v0, %v3123_v35  ;;  %v2107_v28 = vsel %vm147_vm1, 1.0, %v2968_v9 }
  0x32   :  { %v2101_v56 = vsel %vm141_vm2, 1.0, %v2968_v9  ;;  %vm142_vm4 = vcmp.eq.s32.totalorder %v3180_v0, %v3153_v50  ;;  %vm136_vm5 = vcmp.eq.s32.totalorder %v3138_v43, %v3183_v6  ;;  %vm148_vm6 = vcmp.eq.s32.totalorder %v3210_v24, %v3123_v35 }
  0x33   :  { %v2102_v61 = vsel %vm142_vm4, 1.0, %v2968_v9  ;;  %v2096_v10 = vsel %vm136_vm5, 1.0, %v2968_v9  ;;  %vm143_vm7 = vcmp.eq.s32.totalorder %v3180_v0, %v3183_v6  ;;  %v2108_v15 = vsel %vm148_vm6, 1.0, %v2968_v9 }
  0x34   :  { %339 = vadd.xlane.f32.xlu0 %v338_v45  ;;  %v3249_v45 = vperm.slane %v93_v19, 0  ;;  %v374_v43 = vsel %vm289_vm13, %v2096_v10, 0.0  ;;  %v2103_v16 = vsel %vm143_vm7, 1.0, %v2968_v9  ;;  %vm508_vm9 = vcmask 130112  }
  0x35   :  { %284 = vadd.xlane.f32.xlu1 %v283_v47  ;;  %v368_v47 = vsel %vm270_vm0, %v2094_v42, 0.0  ;;  %v410_v25 = vsel %vm270_vm0, %v2108_v15, 0.0  ;;  %vm150_vm12 = vcmp.eq.s32.totalorder %v3210_v24, %v3183_v6  ;;  %vm621_vm4 = vcmask 1041409  }
  0x36   :  { %306 = vadd.xlane.f32.xlu2 %v305_v46  ;;  %v2100_v46 = vsel %vm140_vm10, 1.0, %v2968_v9  ;;  %vm151_vm11 = vcmp.eq.s32.totalorder %v3249_v45, %v3050_v2  ;;  %vm152_vm14 = vcmp.eq.s32.totalorder %v3249_v45, %v3065_v7  ;;  %v2095_v7 = vsel %vm135_vm15, 1.0, %v2968_v9 }
  0x37   :  { %v386_v4 = vsel %vm270_vm0, %v2100_v46, 0.0  ;;  %v2111_v49 = vsel %vm151_vm11, 1.0, %v2968_v9  ;;  %v371_v57 = vsel %vm270_vm0, %v2095_v7, 0.0  ;;  %vm153_vm3 = vcmp.eq.s32.totalorder %v3249_v45, %v3053_v3 }
  0x38   :  { %vm154_vm8 = vcmp.eq.s32.totalorder %v3249_v45, %v3093_v20  ;;  %vm512_vm10 = vcmask 195712   ;;  %vm149_vm11 = vcmp.eq.s32.totalorder %v3210_v24, %v3153_v50  ;;  %v2110_v37 = vsel %vm150_vm12, 1.0, %v2968_v9 }
  0x39   :  { %v2114_v22 = vsel %vm154_vm8, 1.0, %v2968_v9  ;;  %v2109_v36 = vsel %vm149_vm11, 1.0, %v2968_v9  ;;  %vm516_vm15 = vcmask 261312   ;;  %vm156_vm1 = vcmp.eq.s32.totalorder %v3249_v45, %v3153_v50 }
  0x3a   :  { %v428_v30 = vsel %vm270_vm0, %v2114_v22, 0.0  ;;  %v413_v42 = vsel %vm270_vm0, %v2109_v36, 0.0  ;;  %vm157_vm2 = vcmp.eq.s32.totalorder %v3249_v45, %v3183_v6  ;;  %vm623_vm5 = vcmask 1042434  }
  0x3b   :  { %vm625_vm6 = vcmask 1043459   ;;  %vm638_vm7 = vcmask 1041408   ;;  %vm627_vm8 = vcmask 1044484   ;;  %vm629_vm11 = vcmask 1045509  }
  0x3c   :  { %324 = vadd.xlane.f32.xlu0 %v323_v52  ;;  %v2112_v52 = vsel %vm152_vm14, 1.0, %v2968_v9  ;;  %vm155_vm14 = vcmp.eq.s32.totalorder %v3249_v45, %v3123_v35  ;;  %v416_v35 = vsel %vm289_vm13, %v2110_v37, 0.0  ;;  %vm631_vm12 = vcmask 1046534  }
  0x3d   :  { %342 = vadd.xlane.f32.xlu1 %v341_v54  ;;  %v353_v54 = vsel %vm289_vm13, %v2089_v51, 0.0  ;;  %v422_v55 = vsel %vm270_vm0, %v2112_v52, 0.0 }
  0x3e   :  { %357 = vadd.xlane.f32.xlu2 %v356_v53  ;;  %v419_v53 = vsel %vm270_vm0, %v2111_v49, 0.0 }
  0x44   :  { %360 = vadd.xlane.f32.xlu0 %v359_v58  ;;  %v407_v58 = vsel %vm270_vm0, %v2107_v28, 0.0 }
  0x45   :  { %287 = vadd.xlane.f32.xlu1 %v286_v60  ;;  %v2113_v60 = vsel %vm153_vm3, 1.0, %v2968_v9  ;;  %vm520_vm3 = vcmask 326912  }
  0x46   :  { %309 = vadd.xlane.f32.xlu2 %v308_v59  ;;  %v389_v59 = vsel %vm270_vm0, %v2101_v56, 0.0 }
  0x4c   :  { %327 = vadd.xlane.f32.xlu0 %v326_v11  ;;  %v3289_v11 = vand.u32 127, %v79_v1 }
  0x4d   :  { %345 = vadd.xlane.f32.xlu1 %v344_v13  ;;  %v392_v13 = vsel %vm270_vm0, %v2102_v61, 0.0 }
  0x4e   :  { %363 = vadd.xlane.f32.xlu2 %v362_v12  ;;  %v425_v12 = vsel %vm270_vm0, %v2113_v60, 0.0  ;;  %v3294_v14 = vadd.s32 4294967280, %v3289_v11  ;;  %v3302_v1 = vadd.s32 4294967288, %v3289_v11  ;;  %v3355_v45 = vadd.s32 4294967264, %v3289_v11 }
  0x54   :  { %378 = vadd.xlane.f32.xlu0 %v377_v17 }
  0x55   :  { %381 = vadd.xlane.f32.xlu1 %v380_v21 }
  0x56   :  { %291 = vadd.xlane.f32.xlu2 %v290_v18 }
  0x5c   :  { %312 = vadd.xlane.f32.xlu0 %v311_v8  ;;  %v395_v8 = vsel %vm289_vm13, %v2103_v16, 0.0 }
  0x5d   :  { %330 = vadd.xlane.f32.xlu1 %v329_v27 }
  0x5e   :  { %348 = vadd.xlane.f32.xlu2 %v347_v26 }
  0x64   :  { %366 = vadd.xlane.f32.xlu0 %v365_v32 }
  0x65   :  { %384 = vadd.xlane.f32.xlu1 %v383_v34 }
  0x66   :  { %399 = vadd.xlane.f32.xlu2 %v398_v33  ;;  %v3326_v33 = vadd.s32 4294967272, %v3289_v11 }
  0x6c   :  { %402 = vadd.xlane.f32.xlu0 %v401_v39 }
  0x6d   :  { %333 = vadd.xlane.f32.xlu1 %v332_v41  ;;  %v2115_v41 = vsel %vm155_vm14, 1.0, %v2968_v9  ;;  %vm635_vm14 = vcmask 408576  }
  0x6e   :  { %351 = vadd.xlane.f32.xlu2 %v350_v40 }
  0x74   :  { %369 = vadd.xlane.f32.xlu0 %v368_v47  ;;  %v431_v47 = vsel %vm270_vm0, %v2115_v41, 0.0 }
  0x75   :  { %387 = vadd.xlane.f32.xlu1 %v386_v4  ;;  %v2116_v4 = vsel %vm156_vm1, 1.0, %v2968_v9 }
  0x76   :  { %405 = vadd.xlane.f32.xlu2 %v404_v48 }
  0x7c   :  { %420 = vadd.xlane.f32.xlu0 %v419_v53  ;;  %v2117_v53 = vsel %vm157_vm2, 1.0, %v2968_v9 }
  0x7d   :  { %423 = vadd.xlane.f32.xlu1 %v422_v55  ;;  %v434_v55 = vsel %vm270_vm0, %v2116_v4, 0.0  ;;  %v437_v28 = vsel %vm289_vm13, %v2117_v53, 0.0  ;;  %vm524_vm0 = vcmask 392512   ;;  %vm528_vm13 = vcmask 458112  }
  0x7e   :  { %354 = vadd.xlane.f32.xlu2 %v353_v54 }
  0x84   :  { %372 = vadd.xlane.f32.xlu0 %v371_v57 }
  0x85   :  { %390 = vadd.xlane.f32.xlu1 %v389_v59 }
  0x86   :  { %408 = vadd.xlane.f32.xlu2 %v407_v58 }
  0x87   :  { %v273_v63 = vpop.xlane.xlu0 %272 }
  0x88   :  { %v295_v3 = vpop.xlane.xlu1 %294  ;;  %v505_v0 = vperm.slane %v273_v63, %v3289_v11 }
  0x89   :  { %v279_v62 = vpop.xlane.xlu2 %278  ;;  %v530_v26 = vperm.slane %v295_v3, %v3289_v11 }
  0x8a   :  { %v511_v17 = vperm.slane %v279_v62, %v3294_v14 }
  0x8c   :  { %426 = vadd.xlane.f32.xlu0 %v425_v12 }
  0x8d   :  { %375 = vadd.xlane.f32.xlu1 %v374_v43 }
  0x8e   :  { %393 = vadd.xlane.f32.xlu2 %v392_v13 }
  0x8f   :  { %v276_v18 = vpop.xlane.xlu0 %275 }
  0x90   :  { %v507_v5 = vperm.slane %v276_v18, %v3302_v1  ;;  %v298_v20 = vpop.xlane.xlu1 %297 }
  0x91   :  { %v301_v21 = vpop.xlane.xlu2 %300  ;;  %v531_v29 = vperm.slane %v298_v20, %v3302_v1 }
  0x92   :  { %v533_v23 = vperm.slane %v301_v21, %v3294_v14  ;;  %v509_v27 = vsel %vm508_vm9, %v507_v5, %v505_v0  ;;  %v3369_v21 = vadd.s32 4294967256, %v3289_v11 }
  0x93   :  { %v513_v31 = vsel %vm512_vm10, %v511_v17, %v509_v27  ;;  %v532_v32 = vsel %vm508_vm9, %v531_v29, %v530_v26 }
  0x94   :  { %411 = vadd.xlane.f32.xlu0 %v410_v25  ;;  %v534_v34 = vsel %vm512_vm10, %v533_v23, %v532_v32 }
  0x95   :  { %429 = vadd.xlane.f32.xlu1 %v428_v30 }
  0x96   :  { %396 = vadd.xlane.f32.xlu2 %v395_v8 }
  0x97   :  { %v316_v38 = vpop.xlane.xlu0 %315 }
  0x98   :  { %v543_v39 = vperm.slane %v316_v38, %v3289_v11  ;;  %v319_v19 = vpop.xlane.xlu1 %318 }
  0x99   :  { %v282_v24 = vpop.xlane.xlu2 %281  ;;  %v544_v46 = vperm.slane %v319_v19, %v3302_v1 }
  0x9a   :  { %v515_v40 = vperm.slane %v282_v24, %v3326_v33 }
  0x9b   :  { %v545_v48 = vsel %vm508_vm9, %v544_v46, %v543_v39 }
  0x9c   :  { %v517_v44 = vsel %vm516_vm15, %v515_v40, %v513_v31  ;;  %414 = vadd.xlane.f32.xlu0 %v413_v42  ;;  %v3387_v40 = vadd.s32 4294967248, %v3289_v11 }
  0x9d   :  { %432 = vadd.xlane.f32.xlu1 %v431_v47 }
  0x9e   :  { %417 = vadd.xlane.f32.xlu2 %v416_v35 }
  0x9f   :  { %v304_v49 = vpop.xlane.xlu0 %303 }
  0xa0   :  { %v535_v52 = vperm.slane %v304_v49, %v3326_v33  ;;  %v322_v54 = vpop.xlane.xlu1 %321 }
  0xa1   :  { %v337_v51 = vpop.xlane.xlu2 %336  ;;  %v546_v7 = vperm.slane %v322_v54, %v3294_v14 }
  0xa2   :  { %v536_v50 = vsel %vm516_vm15, %v535_v52, %v534_v34  ;;  %v556_v56 = vperm.slane %v337_v51, %v3289_v11 }
  0xa3   :  { %v547_v6 = vsel %vm512_vm10, %v546_v7, %v545_v48 }
  0xa4   :  { %435 = vadd.xlane.f32.xlu0 %v434_v55 }
  0xa5   :  { %438 = vadd.xlane.f32.xlu1 %v437_v28 }
  0xa7   :  { %v340_v57 = vpop.xlane.xlu0 %339 }
  0xa8   :  { %v557_v59 = vperm.slane %v340_v57, %v3302_v1  ;;  %v285_v61 = vpop.xlane.xlu1 %284 }
  0xa9   :  { %v307_v58 = vpop.xlane.xlu2 %306  ;;  %v519_v10 = vperm.slane %v285_v61, %v3355_v45 }
  0xaa   :  { %v537_v60 = vperm.slane %v307_v58, %v3355_v45  ;;  %v558_v62 = vsel %vm508_vm9, %v557_v59, %v556_v56 }
  0xab   :  { %v521_v3 = vsel %vm520_vm3, %v519_v10, %v517_v44 }
  0xac   :  { %v538_v63 = vsel %vm520_vm3, %v537_v60, %v536_v50 }
  0xaf   :  { %v325_v12 = vpop.xlane.xlu0 %324 }
  0xb0   :  { %v548_v43 = vperm.slane %v325_v12, %v3326_v33  ;;  %v343_v15 = vpop.xlane.xlu1 %342 }
  0xb1   :  { %v358_v13 = vpop.xlane.xlu2 %357  ;;  %v559_v17 = vperm.slane %v343_v15, %v3294_v14 }
  0xb2   :  { %v549_v16 = vsel %vm516_vm15, %v548_v43, %v547_v6  ;;  %v569_v0 = vperm.slane %v358_v13, %v3289_v11 }
  0xb3   :  { %v560_v18 = vsel %vm512_vm10, %v559_v17, %v558_v62  ;;  %v446_v17 = vld [vmem:[%s3602_s3 + $0x30] sm:$0x3] }
  0xb4   :  { %2118 = vmatpush.msk.msra.mxu0 %vm638_vm7, %v446_v17 }
  0xb7   :  { %v361_v5 = vpop.xlane.xlu0 %360 }
  0xb8   :  { %v570_v23 = vperm.slane %v361_v5, %v3302_v1  ;;  %v288_v25 = vpop.xlane.xlu1 %287 }
  0xb9   :  { %v310_v22 = vpop.xlane.xlu2 %309  ;;  %v523_v27 = vperm.slane %v288_v25, %v3369_v21  ;;  %v443_v25 = vld [vmem:[%s3602_s3 + $0x18] sm:$0xff] }
  0xba   :  { %v539_v20 = vperm.slane %v310_v22, %v3369_v21  ;;  %v571_v8 = vsel %vm508_vm9, %v570_v23, %v569_v0  ;;  %v445_v22 = vld [vmem:[%s3602_s3 + $0x28] sm:$0xff] }
  0xbb   :  { %v525_v29 = vsel %vm524_vm0, %v523_v27, %v521_v3  ;;  %652 = vmatpush.msra.mxu0 %v445_v22  ;;  %v442_v27 = vld [vmem:[%s3602_s3 + $0x10] sm:$0xff] }
  0xbc   :  { %v540_v26 = vsel %vm524_vm0, %v539_v20, %v538_v63  ;;  %v444_v20 = vld [vmem:[%s3602_s3 + $0x20] sm:$0xff] }
  0xbd   :  { %653 = vmatpush.msra.mxu0 %v444_v20 }
  0xbf   :  { %v328_v30 = vpop.xlane.xlu0 %327  ;;  %654 = vmatpush.msra.mxu0 %v443_v25 }
  0xc0   :  { %v550_v32 = vperm.slane %v328_v30, %v3355_v45  ;;  %v346_v36 = vpop.xlane.xlu1 %345  ;;  %v441_v30 = vld [vmem:[%s3602_s3 + $0x8] sm:$0xff] }
  0xc1   :  { %v364_v31 = vpop.xlane.xlu2 %363  ;;  %v561_v24 = vperm.slane %v346_v36, %v3326_v33  ;;  %655 = vmatpush.msra.mxu0 %v442_v27  ;;  %v662_v36 = vld [vmem:[%s3600_s1] sm:$0xff] }
  0xc2   :  { %v572_v34 = vperm.slane %v364_v31, %v3294_v14  ;;  %v551_v37 = vsel %vm520_vm3, %v550_v32, %v549_v16  ;;  %v440_v31 = vld [vmem:[%s3602_s3] sm:$0xff]  ;;  %2884 = vrcp.f32 %v662_v36 }
  0xc3   :  { %v562_v39 = vsel %vm516_vm15, %v561_v24, %v560_v18  ;;  %656 = vmatpush.msra.mxu0 %v441_v30  ;;  %v2729_v24 = vld [vmem:[%s3603_s4 + $0x20] sm:$0xf0] }
  0xc4   :  { %v3382_v38 = vsel %vm512_vm10, %v572_v34, %v571_v8 }
  0xc5   :  { %657 = vmatpush.msra.mxu0 %v440_v31 }
  0xc7   :  { %v379_v41 = vpop.xlane.xlu0 %378 }
  0xc8   :  { %v582_v42 = vperm.slane %v379_v41, %v3289_v11  ;;  %v382_v44 = vpop.xlane.xlu1 %381 }
  0xc9   :  { %v292_v19 = vpop.xlane.xlu2 %291  ;;  %v583_v47 = vperm.slane %v382_v44, %v3302_v1  ;;  %v2728_v44 = vld [vmem:[%s3603_s4 + $0x1c] sm:$0xf] }
  0xca   :  { %v527_v35 = vperm.slane %v292_v19, %v3387_v40 }
  0xcb   :  { %v3394_v48 = vsel %vm508_vm9, %v583_v47, %v582_v42  ;;  %v2969_v42 = vmov 0  }
  0xcc   :  { %v529_v46 = vsel %vm528_vm13, %v527_v35, %v525_v29  ;;  %2881 = vset.pattern.permute.xlu2 %v2969_v42  ;;  %2882 = vset.pattern.permute.xlu0 %v2969_v42  ;;  %v2726_v42 = vld [vmem:[%s3603_s4 + $0x8] sm:$0xf0] }
  0xcf   :  { %v313_v4 = vpop.xlane.xlu0 %312 }
  0xd0   :  { %v541_v51 = vperm.slane %v313_v4, %v3387_v40  ;;  %v331_v52 = vpop.xlane.xlu1 %330 }
  0xd1   :  { %v349_v49 = vpop.xlane.xlu2 %348  ;;  %v552_v54 = vperm.slane %v331_v52, %v3369_v21 }
  0xd2   :  { %v542_v53 = vsel %vm528_vm13, %v541_v51, %v540_v26  ;;  %v563_v3 = vperm.slane %v349_v49, %v3355_v45 }
  0xd3   :  { %v622_v55 = vsel %vm621_vm4, %v542_v53, %v529_v46  ;;  %v553_v50 = vsel %vm524_vm0, %v552_v54, %v551_v37  ;;  %v2134_v37 = vld [vmem:[%s3603_s4 + $0x18] sm:$0xf]  ;;  %v2136_v46 = vld [vmem:[%s3603_s4 + $0x24] sm:$0xf0]  ;;  %vm2034_vm4 = vcmp.lt.s32.totalorder %v3050_v2, 2 }
  0xd4   :  { %v564_v15 = vsel %vm520_vm3, %v563_v3, %v562_v39  ;;  %v2135_v35 = vor.u32 %v2729_v24, %v2134_v37  ;;  %v2139_v47 = vor.u32 %v2728_v44, %v2136_v46  ;;  %v2124_v44 = vld [vmem:[%s3603_s4 + $0xc] sm:$0xf0] }
  0xd6   :  { %729 = vmatpush.bf16.msra.mxu3 %v2135_v35  ;;  %742 = vmatpush.bf16.msrb.mxu0 %v2139_v47  ;;  %v2725_v35 = vld [vmem:[%s3603_s4 + $0x4] sm:$0xf]  ;;  %v2142_v47 = vld [vmem:[%s3603_s4 + $0x20] sm:$0xf] }
  0xd7   :  { %v367_v7 = vpop.xlane.xlu0 %366  ;;  %v2127_v46 = vor.u32 %v2725_v35, %v2124_v44  ;;  %v2173_v35 = vld [vmem:[#allocation3 + $0x30] sm:$0xf] }
  0xd8   :  { %v3402_v6 = vpop.xlane.xlu1 %384  ;;  %v574_v32 = vperm.slane %v367_v7, %v3326_v33  ;;  %v2885_v7 = vpop.eup %2884 }
  0xd9   :  { %v3400_v28 = vpop.xlane.xlu2 %399  ;;  %v585_v51 = vperm.slane %v3402_v6, %v3294_v14  ;;  %666 = vperm.xlu2 %2881, %v2885_v7   ;;  %v2750_v7 = vld [vmem:[#allocation3 + $0x98] sm:$0xf0] }
  0xda   :  { %v575_v4 = vsel %vm516_vm15, %v574_v32, %v3382_v38  ;;  %743 = vmatpush.bf16.msrb.mxu0 %v2127_v46 }
  0xdb   :  { %v586_v6 = vsel %vm512_vm10, %v585_v51, %v3394_v48 }
  0xdf   :  { %v3404_v56 = vpop.xlane.xlu0 %402 }
  0xe0   :  { %v334_v58 = vpop.xlane.xlu1 %333  ;;  %v596_v48 = vperm.slane %v3404_v56, %v3302_v1 }
  0xe1   :  { %v352_v57 = vpop.xlane.xlu2 %351  ;;  %v554_v59 = vperm.slane %v334_v58, %v3387_v40 }
  0xe2   :  { %v565_v12 = vperm.slane %v352_v57, %v3369_v21 }
  0xe3   :  { %v555_v60 = vsel %vm528_vm13, %v554_v59, %v553_v50 }
  0xe4   :  { %v624_v61 = vsel %vm623_vm5, %v555_v60, %v622_v55  ;;  %v566_v18 = vsel %vm524_vm0, %v565_v12, %v564_v15 }
  0xe7   :  { %v370_v62 = vpop.xlane.xlu0 %369 }
  0xe8   :  { %v3410_v10 = vpop.xlane.xlu1 %387  ;;  %v576_v34 = vperm.slane %v370_v62, %v3355_v45 }
  0xe9   :  { %v3408_v63 = vpop.xlane.xlu2 %405  ;;  %v587_v54 = vperm.slane %v3410_v10, %v3326_v33 }
  0xea   :  { %v577_v52 = vsel %vm520_vm3, %v576_v34, %v575_v4  ;;  %v598_v17 = vperm.slane %v3408_v63, %v3294_v14  ;;  %v2730_v4 = vld [vmem:[%s3603_s4 + $0x28] sm:$0xf0] }
  0xeb   :  { %v588_v59 = vsel %vm516_vm15, %v587_v54, %v586_v6  ;;  %v2143_v51 = vor.u32 %v2730_v4, %v2142_v47  ;;  %v2233_v54 = vld [vmem:[#allocation3 + $0xa8] sm:$0xf]  ;;  %v2777_v6 = vld [vmem:[#allocation3 + $0x170] sm:$0xf0]  ;;  %v2269_v4 = vld [vmem:[#allocation3 + $0xf0] sm:$0xf] }
  0xef   :  { %v3414_v13 = vpop.xlane.xlu0 %420 }
  0xf0   :  { %v3422_v0 = vpop.xlane.xlu1 %423  ;;  %v608_v25 = vperm.slane %v3414_v13, %v3289_v11 }
  0xf1   :  { %v355_v43 = vpop.xlane.xlu2 %354 }
  0xf2   :  { %v567_v16 = vperm.slane %v355_v43, %v3387_v40 }
  0xf4   :  { %v568_v5 = vsel %vm528_vm13, %v567_v16, %v566_v18  ;;  %v595_v16 = vperm.slane %v3400_v28, %v3289_v11  ;;  %v609_v28 = vperm.slane %v3422_v0, %v3302_v1 }
  0xf5   :  { %v626_v23 = vsel %vm625_vm6, %v568_v5, %v624_v61 }
  0xf6   :  { %v597_v20 = vsel %vm508_vm9, %v596_v48, %v595_v16  ;;  %v610_v13 = vsel %vm508_vm9, %v609_v28, %v608_v25  ;;  %vm633_vm9 = vcmask 1047559   ;;  %v2223_v16 = vld [vmem:[#allocation3 + $0x9c] sm:$0xf0]  ;;  %v2744_v28 = vld [vmem:[#allocation3 + $0x68] sm:$0xf0] }
  0xf7   :  { %v373_v8 = vpop.xlane.xlu0 %372  ;;  %v599_v63 = vsel %vm512_vm10, %v598_v17, %v597_v20  ;;  %v2211_v20 = vld [vmem:[#allocation3 + $0x84] sm:$0xf0]  ;;  %v2197_v25 = vld [vmem:[#allocation3 + $0x60] sm:$0xf] }
  0xf8   :  { %v391_v29 = vpop.xlane.xlu1 %390  ;;  %v578_v39 = vperm.slane %v373_v8, %v3369_v21 }
  0xf9   :  { %v3434_v26 = vpop.xlane.xlu2 %408  ;;  %v589_v50 = vperm.slane %v391_v29, %v3355_v45 }
  0xfa   :  { %v579_v55 = vsel %vm524_vm0, %v578_v39, %v577_v52  ;;  %v600_v5 = vperm.slane %v3434_v26, %v3326_v33  ;;  %v2727_v52 = vld [vmem:[%s3603_s4 + $0x10] sm:$0xf0] }
  0xfb   :  { %v590_v62 = vsel %vm520_vm3, %v589_v50, %v588_v59  ;;  %v2221_v50 = vld [vmem:[#allocation3 + $0x90] sm:$0xf]  ;;  %v2752_v59 = vld [vmem:[#allocation3 + $0xac] sm:$0xf] }
  0xfc   :  { %v601_v26 = vsel %vm516_vm15, %v600_v5, %v599_v63 }
  0xff   :  { %v427_v41 = vpop.xlane.xlu0 %426 }
 0x100   :  { %v376_v49 = vpop.xlane.xlu1 %375  ;;  %v611_v27 = vperm.slane %v427_v41, %v3294_v14 }
 0x101   :  { %v394_v19 = vpop.xlane.xlu2 %393  ;;  %v580_v53 = vperm.slane %v376_v49, %v3387_v40  ;;  %v2130_v49 = vld [vmem:[%s3603_s4 + $0x8] sm:$0xf] }
 0x102   :  { %v591_v57 = vperm.slane %v394_v19, %v3369_v21  ;;  %v612_v0 = vsel %vm512_vm10, %v611_v27, %v610_v13  ;;  %v2293_v27 = vld [vmem:[#allocation3 + $0x120] sm:$0xf]  ;;  %v2425_v13 = vld [vmem:[#allocation3 + $0x228] sm:$0xf]  ;;  %vm719_vm10 = vcmask 261120  }
 0x103   :  { %v581_v38 = vsel %vm528_vm13, %v580_v53, %v579_v55  ;;  %v2131_v53 = vor.u32 %v2727_v52, %v2130_v49  ;;  %v2753_v55 = vld [vmem:[#allocation3 + $0xb0] sm:$0xf0]  ;;  %v2401_v49 = vld [vmem:[#allocation3 + $0x1f8] sm:$0xf] }
 0x104   :  { %v628_v58 = vsel %vm627_vm8, %v581_v38, %v626_v23  ;;  %v592_v3 = vsel %vm524_vm0, %v591_v57, %v590_v62  ;;  %v2234_v38 = vor.u32 %v2753_v55, %v2233_v54  ;;  %v2329_v57 = vld [vmem:[#allocation3 + $0x168] sm:$0xf]  ;;  %v2747_v62 = vld [vmem:[#allocation3 + $0x80] sm:$0xf0]  ;;  %v2737_v54 = vld [vmem:[#allocation3 + $0x34] sm:$0xf] }
 0x105   :  { %v2175_v55 = vld [vmem:[#allocation3 + $0x3c] sm:$0xf0] }
 0x106   :  { %1256 = vmatpush.bf16.msra.mxu1 %v2234_v38  ;;  %v2735_v38 = vld [vmem:[#allocation3 + $0x20] sm:$0xf0] }
 0x107   :  { %v412_v60 = vpop.xlane.xlu0 %411 }
 0x108   :  { %v430_v12 = vpop.xlane.xlu1 %429  ;;  %v602_v22 = vperm.slane %v412_v60, %v3355_v45  ;;  %v2235_v60 = vld [vmem:[#allocation3 + $0xb4] sm:$0xf0] }
 0x109   :  { %v397_v61 = vpop.xlane.xlu2 %396  ;;  %v613_v29 = vperm.slane %v430_v12, %v3326_v33  ;;  %v2317_v12 = vld [vmem:[#allocation3 + $0x150] sm:$0xf] }
 0x10a   :  { %v593_v10 = vperm.slane %v397_v61, %v3387_v40  ;;  %v603_v30 = vsel %vm520_vm3, %v602_v22, %v601_v26  ;;  %v2209_v61 = vld [vmem:[#allocation3 + $0x78] sm:$0xf]  ;;  %v2771_v22 = vld [vmem:[#allocation3 + $0x140] sm:$0xf0]  ;;  %v2768_v26 = vld [vmem:[#allocation3 + $0x128] sm:$0xf0] }
 0x10b   :  { %v614_v34 = vsel %vm516_vm15, %v613_v29, %v612_v0  ;;  %v2210_v5 = vor.u32 %v2747_v62, %v2209_v61  ;;  %v2743_v29 = vld [vmem:[#allocation3 + $0x64] sm:$0xf]  ;;  %v2734_v61 = vld [vmem:[#allocation3 + $0x1c] sm:$0xf]  ;;  %v2163_v62 = vld [vmem:[#allocation3 + $0x24] sm:$0xf0] }
 0x10c   :  { %v594_v43 = vsel %vm528_vm13, %v593_v10, %v592_v3  ;;  %v2330_v10 = vor.u32 %v2777_v6, %v2329_v57  ;;  %v2238_v3 = vor.u32 %v2752_v59, %v2235_v60  ;;  %v2257_v6 = vld [vmem:[#allocation3 + $0xd8] sm:$0xf]  ;;  %v2759_v60 = vld [vmem:[#allocation3 + $0xe0] sm:$0xf0] }
 0x10d   :  { %v630_v15 = vsel %vm629_vm11, %v594_v43, %v628_v58  ;;  %v2222_v58 = vor.u32 %v2750_v7, %v2221_v50  ;;  %v2774_v43 = vld [vmem:[#allocation3 + $0x158] sm:$0xf0]  ;;  %v2161_v50 = vld [vmem:[#allocation3 + $0x18] sm:$0xf] }
 0x10e   :  { %1269 = vmatpush.bf16.msra.mxu2 %v2330_v10  ;;  %v2318_v48 = vor.u32 %v2774_v43, %v2317_v12  ;;  %v2162_v59 = vor.u32 %v2735_v38, %v2161_v50  ;;  %v2149_v10 = vld [vmem:[#allocation3] sm:$0xf]  ;;  %v2776_v12 = vld [vmem:[#allocation3 + $0x16c] sm:$0xf]  ;;  %v2331_v43 = vld [vmem:[#allocation3 + $0x174] sm:$0xf0] }
 0x10f   :  { %v415_v18 = vpop.xlane.xlu0 %414  ;;  %1257 = vmatpush.bf16.msra.mxu1 %v2222_v58  ;;  %v2178_v58 = vor.u32 %v2737_v54, %v2175_v55  ;;  %v2403_v54 = vld [vmem:[#allocation3 + $0x204] sm:$0xf0]  ;;  %v2313_v38 = vld [vmem:[#allocation3 + $0x140] sm:$0xf] }
 0x110   :  { %v433_v23 = vpop.xlane.xlu1 %432  ;;  %v604_v56 = vperm.slane %v415_v18, %v3369_v21  ;;  %v2305_v18 = vld [vmem:[#allocation3 + $0x138] sm:$0xf] }
 0x111   :  { %v418_v8 = vpop.xlane.xlu2 %417  ;;  %v615_v11 = vperm.slane %v433_v23, %v3355_v45  ;;  %v2746_v23 = vld [vmem:[#allocation3 + $0x7c] sm:$0xf] }
 0x112   :  { %v606_v31 = vperm.slane %v418_v8, %v3387_v40  ;;  %v605_v1 = vsel %vm524_vm0, %v604_v56, %v603_v30  ;;  %1270 = vmatpush.bf16.msra.mxu2 %v2318_v48  ;;  %v2306_v8 = vor.u32 %v2771_v22, %v2305_v18  ;;  %v2214_v63 = vor.u32 %v2746_v23, %v2211_v20  ;;  %v2773_v18 = vld [vmem:[#allocation3 + $0x154] sm:$0xf]  ;;  %v2770_v23 = vld [vmem:[#allocation3 + $0x13c] sm:$0xf]  ;;  %v2307_v20 = vld [vmem:[#allocation3 + $0x144] sm:$0xf0] }
 0x113   :  { %v616_v33 = vsel %vm520_vm3, %v615_v11, %v614_v34  ;;  %1258 = vmatpush.bf16.msra.mxu1 %v2210_v5  ;;  %v2199_v11 = vld [vmem:[#allocation3 + $0x6c] sm:$0xf0]  ;;  %v2741_v34 = vld [vmem:[#allocation3 + $0x50] sm:$0xf0]  ;;  %v2319_v5 = vld [vmem:[#allocation3 + $0x15c] sm:$0xf0] }
 0x114   :  { %v607_v36 = vsel %vm528_vm13, %v606_v31, %v605_v1  ;;  %v2198_v31 = vor.u32 %v2744_v28, %v2197_v25  ;;  %v2801_v1 = vld [vmem:[#allocation3 + $0x230] sm:$0xf0]  ;;  %v2322_v22 = vor.u32 %v2773_v18, %v2319_v5  ;;  %v2310_v25 = vor.u32 %v2770_v23, %v2307_v20  ;;  %v2245_v28 = vld [vmem:[#allocation3 + $0xc0] sm:$0xf]  ;;  %v2755_v18 = vld [vmem:[#allocation3 + $0xc4] sm:$0xf] }
 0x115   :  { %v632_v41 = vsel %vm631_vm12, %v607_v36, %v630_v15  ;;  %v2749_v15 = vld [vmem:[#allocation3 + $0x94] sm:$0xf]  ;;  %v2788_v23 = vld [vmem:[#allocation3 + $0x1cc] sm:$0xf]  ;;  %v2379_v20 = vld [vmem:[#allocation3 + $0x1d4] sm:$0xf0] }
 0x116   :  { %v2226_v17 = vor.u32 %v2749_v15, %v2223_v16  ;;  %1271 = vmatpush.bf16.msra.mxu2 %v2306_v8  ;;  %v2258_v15 = vor.u32 %v2759_v60, %v2257_v6  ;;  %v2166_v16 = vor.u32 %v2734_v61, %v2163_v62  ;;  %v2389_v8 = vld [vmem:[#allocation3 + $0x1e0] sm:$0xf]  ;;  %v2783_v6 = vld [vmem:[#allocation3 + $0x1a0] sm:$0xf0]  ;;  %v2259_v61 = vld [vmem:[#allocation3 + $0xe4] sm:$0xf0] }
 0x117   :  { %v436_v32 = vpop.xlane.xlu0 %435  ;;  %1259 = vmatpush.bf16.msra.mxu1 %v2198_v31  ;;  %v2791_v62 = vld [vmem:[#allocation3 + $0x1e4] sm:$0xf] }
 0x118   :  { %v617_v14 = vperm.slane %v436_v32, %v3369_v21  ;;  %v439_v37 = vpop.xlane.xlu1 %438  ;;  %v2122_v21 = vld [vmem:[%s3603_s4] sm:$0xf]  ;;  %v2185_v32 = vld [vmem:[#allocation3 + $0x48] sm:$0xf] }
 0x119   :  { %v619_v45 = vperm.slane %v439_v37, %v3387_v40  ;;  %v2123_v40 = vor.u32 %v2726_v42, %v2122_v21  ;;  %v2202_v37 = vor.u32 %v2743_v29, %v2199_v11  ;;  %v2740_v21 = vld [vmem:[#allocation3 + $0x4c] sm:$0xf]  ;;  %v2187_v42 = vld [vmem:[#allocation3 + $0x54] sm:$0xf0]  ;;  %v2151_v29 = vld [vmem:[#allocation3 + $0xc] sm:$0xf0] }
 0x11a   :  { %v618_v24 = vsel %vm524_vm0, %v617_v14, %v616_v33  ;;  %v2426_v14 = vor.u32 %v2801_v1, %v2425_v13  ;;  %v2294_v33 = vor.u32 %v2768_v26, %v2293_v27  ;;  %v2190_v47 = vor.u32 %v2740_v21, %v2187_v42  ;;  %v2792_v27 = vld [vmem:[#allocation3 + $0x1e8] sm:$0xf0]  ;;  %v2731_v26 = vld [vmem:[#allocation3 + $0x4] sm:$0xf]  ;;  %v2295_v13 = vld [vmem:[#allocation3 + $0x12c] sm:$0xf0] }
 0x11b   :  { %v620_v39 = vsel %vm528_vm13, %v619_v45, %v618_v24  ;;  %730 = vmatpush.bf16.msra.mxu3 %v2123_v40  ;;  %v2281_v24 = vld [vmem:[#allocation3 + $0x108] sm:$0xf]  ;;  %v2413_v45 = vld [vmem:[#allocation3 + $0x210] sm:$0xf]  ;;  %v2738_v40 = vld [vmem:[#allocation3 + $0x38] sm:$0xf0]  ;;  %v2154_v31 = vor.u32 %v2731_v26, %v2151_v29 }
 0x11c   :  { %v634_v19 = vsel %vm633_vm9, %v620_v39, %v632_v41  ;;  %v2798_v39 = vld [vmem:[#allocation3 + $0x218] sm:$0xf0]  ;;  %v2186_v41 = vor.u32 %v2741_v34, %v2185_v32  ;;  %1272 = vmatpush.bf16.msra.mxu2 %v2294_v33  ;;  %v2174_v52 = vor.u32 %v2738_v40, %v2173_v35  ;;  %v2767_v11 = vld [vmem:[#allocation3 + $0x124] sm:$0xf]  ;;  %v2800_v1 = vld [vmem:[#allocation3 + $0x22c] sm:$0xf] }
 0x11d   :  { %2119 = vmatmul.msk.f32.vlgmr.msra.gmra.mxu0 %vm635_vm14, %v634_v19  ;;  %v2765_v19 = vld [vmem:[#allocation3 + $0x110] sm:$0xf0]  ;;  %v2414_v44 = vor.u32 %v2798_v39, %v2413_v45  ;;  %v2427_v32 = vld [vmem:[#allocation3 + $0x234] sm:$0xf0]  ;;  %v2337_v34 = vld [vmem:[#allocation3 + $0x170] sm:$0xf] }
 0x11e   :  { %1295 = vmatpush.bf16.msra.mxu0 %v2238_v3  ;;  %v2282_v46 = vor.u32 %v2765_v19, %v2281_v24  ;;  %1260 = vmatpush.bf16.msra.mxu1 %v2186_v41  ;;  %v2732_v3 = vld [vmem:[#allocation3 + $0x8] sm:$0xf0]  ;;  %v2789_v24 = vld [vmem:[#allocation3 + $0x1d0] sm:$0xf0]  ;;  %v2283_v41 = vld [vmem:[#allocation3 + $0x114] sm:$0xf0] }
 0x11f   :  { %755 = vmatpush.bf16.msrb.mxu3 %v2143_v51  ;;  %v2795_v51 = vld [vmem:[#allocation3 + $0x200] sm:$0xf0]  ;;  %v2150_v48 = vor.u32 %v2732_v3, %v2149_v10  ;;  %v2764_v45 = vld [vmem:[#allocation3 + $0x10c] sm:$0xf]  ;;  %v2797_v19 = vld [vmem:[#allocation3 + $0x214] sm:$0xf] }
 0x120   :  { %v2402_v7 = vor.u32 %v2795_v51, %v2401_v49  ;;  %1273 = vmatpush.bf16.msra.mxu2 %v2282_v46  ;;  %v2415_v21 = vld [vmem:[#allocation3 + $0x21c] sm:$0xf0]  ;;  %v2286_v42 = vor.u32 %v2764_v45, %v2283_v41  ;;  %v2325_v40 = vld [vmem:[#allocation3 + $0x158] sm:$0xf]  ;;  %v2761_v49 = vld [vmem:[#allocation3 + $0xf4] sm:$0xf] }
 0x121   :  { %v2418_v35 = vor.u32 %v2797_v19, %v2415_v21  ;;  %v2391_v10 = vld [vmem:[#allocation3 + $0x1ec] sm:$0xf0]  ;;  %v2766_v26 = vld [vmem:[#allocation3 + $0x118] sm:$0xf0]  ;;  %v2265_v41 = vld [vmem:[#allocation3 + $0xe0] sm:$0xf] }
 0x122   :  { %1296 = vmatpush.bf16.msra.mxu0 %v2226_v17  ;;  %1261 = vmatpush.bf16.msra.mxu1 %v2174_v52  ;;  %v2334_v17 = vor.u32 %v2776_v12, %v2331_v43  ;;  %v2271_v52 = vld [vmem:[#allocation3 + $0xfc] sm:$0xf0]  ;;  %v2394_v12 = vor.u32 %v2791_v62, %v2391_v10  ;;  %v2301_v43 = vld [vmem:[#allocation3 + $0x128] sm:$0xf]  ;;  %v2760_v19 = vld [vmem:[#allocation3 + $0xe8] sm:$0xf0] }
 0x123   :  { %756 = vmatpush.bf16.msrb.mxu3 %v2131_v53  ;;  %v2762_v53 = vld [vmem:[#allocation3 + $0xf8] sm:$0xf0]  ;;  %v2274_v55 = vor.u32 %v2761_v49, %v2271_v52  ;;  %v2253_v49 = vld [vmem:[#allocation3 + $0xc8] sm:$0xf]  ;;  %v2169_v10 = vld [vmem:[#allocation3 + $0x20] sm:$0xf] }
 0x124   :  { %v2270_v57 = vor.u32 %v2762_v53, %v2269_v4  ;;  %v2786_v4 = vld [vmem:[#allocation3 + $0x1b8] sm:$0xf0]  ;;  %vm2029_vm0 = vcmask 7168  }
 0x125   :  { %v2794_v53 = vld [vmem:[#allocation3 + $0x1fc] sm:$0xf] }
 0x126   :  { %1297 = vmatpush.bf16.msra.mxu0 %v2214_v63  ;;  %1274 = vmatpush.bf16.msra.mxu2 %v2270_v57  ;;  %v2406_v50 = vor.u32 %v2794_v53, %v2403_v54 }
 0x127   :  { %1262 = vmatpush.bf16.msra.mxu1 %v2162_v59  ;;  %v2758_v59 = vld [vmem:[#allocation3 + $0xdc] sm:$0xf] }
 0x128   :  { %v2262_v3 = vor.u32 %v2758_v59, %v2259_v61 }
 0x12a   :  { %1298 = vmatpush.bf16.msra.mxu0 %v2202_v37  ;;  %1275 = vmatpush.bf16.msra.mxu2 %v2258_v15  ;;  %v2377_v37 = vld [vmem:[#allocation3 + $0x1c8] sm:$0xf]  ;;  %v2769_v15 = vld [vmem:[#allocation3 + $0x130] sm:$0xf0] }
 0x12b   :  { %1263 = vmatpush.bf16.msra.mxu1 %v2150_v48  ;;  %v2378_v39 = vor.u32 %v2789_v24, %v2377_v37  ;;  %v2341_v48 = vld [vmem:[#allocation3 + $0x180] sm:$0xf]  ;;  %v2355_v37 = vld [vmem:[#allocation3 + $0x1a4] sm:$0xf0] }
 0x12c   :  { %v2217_v24 = vld [vmem:[#allocation3 + $0x80] sm:$0xf] }
 0x12e   :  { %1299 = vmatpush.bf16.msra.mxu0 %v2190_v47  ;;  %v2365_v47 = vld [vmem:[#allocation3 + $0x1b0] sm:$0xf] }
 0x12f   :  { %1308 = vmatpush.bf16.msrb.mxu1 %v2334_v17  ;;  %v2366_v51 = vor.u32 %v2786_v4, %v2365_v47  ;;  %v2780_v17 = vld [vmem:[#allocation3 + $0x188] sm:$0xf0]  ;;  %v2745_v4 = vld [vmem:[#allocation3 + $0x70] sm:$0xf0] }
 0x130   :  { %v2342_v5 = vor.u32 %v2780_v17, %v2341_v48  ;;  %v2802_v48 = vld [vmem:[#allocation3 + $0x238] sm:$0xf0]  ;;  %v2157_v17 = vld [vmem:[#allocation3 + $0x8] sm:$0xf] }
 0x132   :  { %1300 = vmatpush.bf16.msra.mxu0 %v2178_v58  ;;  %v2353_v58 = vld [vmem:[#allocation3 + $0x198] sm:$0xf] }
 0x133   :  { %v667_v56 = vpop.permute.xlu2 %666  ;;  %1309 = vmatpush.bf16.msrb.mxu1 %v2322_v22  ;;  %v2354_v60 = vor.u32 %v2783_v6, %v2353_v58  ;;  %v2247_v22 = vld [vmem:[#allocation3 + $0xcc] sm:$0xf0]  ;;  %v2181_v58 = vld [vmem:[#allocation3 + $0x38] sm:$0xf]  ;;  %v2739_v6 = vld [vmem:[#allocation3 + $0x40] sm:$0xf0] }
 0x134   :  { %v2182_v59 = vor.u32 %v2739_v6, %v2181_v58  ;;  %v2784_v58 = vld [vmem:[#allocation3 + $0x1a8] sm:$0xf0]  ;;  %v2461_v6 = vld [vmem:[#allocation5 + $0x30] sm:$0xf] }
 0x136   :  { %1301 = vmatpush.bf16.msra.mxu0 %v2166_v16  ;;  %v2302_v16 = vor.u32 %v2769_v15, %v2301_v43 }
 0x137   :  { %1310 = vmatpush.bf16.msrb.mxu1 %v2310_v25  ;;  %v2250_v25 = vor.u32 %v2755_v18, %v2247_v22  ;;  %v2733_v18 = vld [vmem:[#allocation3 + $0x10] sm:$0xf0] }
 0x13a   :  { %1302 = vmatpush.bf16.msra.mxu0 %v2154_v31  ;;  %v2367_v31 = vld [vmem:[#allocation3 + $0x1bc] sm:$0xf0] }
 0x19a   :  { %v659_v30 = vpop.f32.mrf.mxu0 }
 0x19b   :  { %v669_v0 = vmul.f32 %v667_v56, %v659_v30  ;;  %v2756_v56 = vld [vmem:[#allocation3 + $0xc8] sm:$0xf0]  ;;  %v2390_v30 = vor.u32 %v2792_v27, %v2389_v8  ;;  %v2754_v8 = vld [vmem:[#allocation3 + $0xb8] sm:$0xf0] }
 0x19c   :  { %v2246_v63 = vor.u32 %v2756_v56, %v2245_v28  ;;  %v2382_v28 = vor.u32 %v2788_v23, %v2379_v20  ;;  %v2241_v56 = vld [vmem:[#allocation3 + $0xb0] sm:$0xf] }
 0x19d   :  { %v670_v36 = vpack.c.bf16 %v669_v0, %v669_v0  ;;  %v2298_v0 = vor.u32 %v2767_v11, %v2295_v13  ;;  %v2242_v27 = vor.u32 %v2754_v8, %v2241_v56  ;;  %v2229_v11 = vld [vmem:[#allocation3 + $0x98] sm:$0xf]  ;;  %v2799_v56 = vld [vmem:[#allocation3 + $0x220] sm:$0xf0] }
 0x19e   :  { %1276 = vmatpush.bf16.msra.mxu2 %v2246_v63  ;;  %v2289_v63 = vld [vmem:[#allocation3 + $0x110] sm:$0xf] }
 0x19f   :  { %2144 = vmatmul.msk.bf16.vlgmr.msra.gmra.mxu3 %vm719_vm10, %v670_v36  ;;  %2145 = vmatmul.msk.bf16.vlgmr.msrb.gmra.mxu0 %vm719_vm10, %v670_v36  ;;  %v2290_v29 = vor.u32 %v2766_v26, %v2289_v63  ;;  %v2825_v26 = vld [vmem:[#allocation5 + $0xb0] sm:$0xf0] }
 0x1a0   :  { %1282 = vmatpush.bf16.msra.mxu3 %v2426_v14  ;;  %v2778_v14 = vld [vmem:[#allocation3 + $0x178] sm:$0xf0]  ;;  %1311 = vmatpush.bf16.msrb.mxu1 %v2298_v0  ;;  %v2277_v0 = vld [vmem:[#allocation3 + $0xf8] sm:$0xf] }
 0x1a1   :  { %v2338_v33 = vor.u32 %v2778_v14, %v2337_v34 }
 0x1a3   :  { %1347 = vmatpush.bf16.msrb.mxu0 %v2338_v33  ;;  %v2782_v33 = vld [vmem:[#allocation3 + $0x19c] sm:$0xf] }
 0x1a4   :  { %1283 = vmatpush.bf16.msra.mxu3 %v2414_v44  ;;  %v2775_v44 = vld [vmem:[#allocation3 + $0x160] sm:$0xf0]  ;;  %1312 = vmatpush.bf16.msrb.mxu1 %v2286_v42  ;;  %v2358_v45 = vor.u32 %v2782_v33, %v2355_v37  ;;  %v2266_v42 = vor.u32 %v2760_v19, %v2265_v41  ;;  %v2397_v37 = vld [vmem:[#allocation3 + $0x1e8] sm:$0xf]  ;;  %v2790_v41 = vld [vmem:[#allocation3 + $0x1d8] sm:$0xf0] }
 0x1a5   :  { %v2326_v46 = vor.u32 %v2775_v44, %v2325_v40  ;;  %v2779_v40 = vld [vmem:[#allocation3 + $0x184] sm:$0xf]  ;;  %v2343_v44 = vld [vmem:[#allocation3 + $0x18c] sm:$0xf0]  ;;  %v2485_v19 = vld [vmem:[#allocation5 + $0x60] sm:$0xf] }
 0x1a6   :  { %v2346_v47 = vor.u32 %v2779_v40, %v2343_v44  ;;  %v2819_v33 = vld [vmem:[#allocation5 + $0x80] sm:$0xf0]  ;;  %v2849_v40 = vld [vmem:[#allocation5 + $0x170] sm:$0xf0] }
 0x1a7   :  { %1348 = vmatpush.bf16.msrb.mxu0 %v2326_v46  ;;  %v2205_v46 = vld [vmem:[#allocation3 + $0x68] sm:$0xf] }
 0x1a8   :  { %1284 = vmatpush.bf16.msra.mxu3 %v2402_v7  ;;  %v2772_v7 = vld [vmem:[#allocation3 + $0x148] sm:$0xf0]  ;;  %1313 = vmatpush.bf16.msrb.mxu1 %v2274_v55  ;;  %v2206_v52 = vor.u32 %v2745_v4, %v2205_v46  ;;  %v2373_v4 = vld [vmem:[#allocation3 + $0x1b8] sm:$0xf] }
 0x1a9   :  { %v2314_v57 = vor.u32 %v2772_v7, %v2313_v38  ;;  %v2742_v38 = vld [vmem:[#allocation3 + $0x58] sm:$0xf0] }
 0x1ab   :  { %1349 = vmatpush.bf16.msrb.mxu0 %v2314_v57 }
 0x1ac   :  { %1285 = vmatpush.bf16.msra.mxu3 %v2390_v30  ;;  %1314 = vmatpush.bf16.msrb.mxu1 %v2262_v3  ;;  %v2785_v30 = vld [vmem:[#allocation3 + $0x1b4] sm:$0xf]  ;;  %v2736_v3 = vld [vmem:[#allocation3 + $0x28] sm:$0xf0] }
 0x1ad   :  { %v2370_v13 = vor.u32 %v2785_v30, %v2367_v31  ;;  %v2170_v43 = vor.u32 %v2736_v3, %v2169_v10  ;;  %v2409_v30 = vld [vmem:[#allocation3 + $0x200] sm:$0xf]  ;;  %v2796_v31 = vld [vmem:[#allocation3 + $0x208] sm:$0xf0]  ;;  %v2349_v10 = vld [vmem:[#allocation3 + $0x188] sm:$0xf] }
 0x1ae   :  { %v2781_v3 = vld [vmem:[#allocation3 + $0x190] sm:$0xf0] }
 0x1af   :  { %2146 = vmatmul.msk.bf16.vlgmr.msrb.gmra.mxu3 %vm719_vm10, %v670_v36  ;;  %v2430_v36 = vor.u32 %v2800_v1, %v2427_v32  ;;  %1350 = vmatpush.bf16.msrb.mxu0 %v2302_v16  ;;  %v2751_v1 = vld [vmem:[#allocation3 + $0xa0] sm:$0xf0]  ;;  %v2433_v16 = vld [vmem:[#allocation3 + $0x230] sm:$0xf] }
 0x1b0   :  { %1286 = vmatpush.bf16.msra.mxu3 %v2378_v39  ;;  %1315 = vmatpush.bf16.msrb.mxu1 %v2250_v25  ;;  %v2763_v32 = vld [vmem:[#allocation3 + $0x100] sm:$0xf0]  ;;  %v2230_v34 = vor.u32 %v2751_v1, %v2229_v11  ;;  %v2748_v39 = vld [vmem:[#allocation3 + $0x88] sm:$0xf0]  ;;  %v2434_v20 = vor.u32 %v2802_v48, %v2433_v16  ;;  %v2821_v48 = vld [vmem:[#allocation5 + $0x94] sm:$0xf] }
 0x1b1   :  { %1321 = vmatpush.bf16.msrb.mxu2 %v2430_v36  ;;  %v2278_v14 = vor.u32 %v2763_v32, %v2277_v0  ;;  %v3544_v36 = vld [vmem:[%s3604_s5] sm:$0x7]  ;;  %v2218_v21 = vor.u32 %v2748_v39, %v2217_v24  ;;  %v2793_v24 = vld [vmem:[#allocation3 + $0x1f0] sm:$0xf0]  ;;  %v2385_v39 = vld [vmem:[#allocation3 + $0x1d0] sm:$0xf] }
 0x1b2   :  { %v681_v57 = vperm.slane %v3544_v36, 0  ;;  %v683_v8 = vperm.slane %v3544_v36, 2 }
 0x1b3   :  { %1351 = vmatpush.bf16.msrb.mxu0 %v2290_v29  ;;  %v2509_v29 = vld [vmem:[#allocation5 + $0x90] sm:$0xf] }
 0x1b4   :  { %1287 = vmatpush.bf16.msra.mxu3 %v2366_v51  ;;  %v2757_v51 = vld [vmem:[#allocation3 + $0xd0] sm:$0xf0] }
 0x1b5   :  { %1322 = vmatpush.bf16.msrb.mxu2 %v2418_v35  ;;  %v682_v35 = vperm.slane %v3544_v36, 1  ;;  %v2254_v53 = vor.u32 %v2757_v51, %v2253_v49  ;;  %v2787_v51 = vld [vmem:[#allocation3 + $0x1c0] sm:$0xf0] }
 0x1b7   :  { %1352 = vmatpush.bf16.msrb.mxu0 %v2278_v14  ;;  %v2497_v14 = vld [vmem:[#allocation5 + $0x78] sm:$0xf] }
 0x1b8   :  { %1288 = vmatpush.bf16.msra.mxu3 %v2354_v60  ;;  %v2498_v36 = vor.u32 %v2819_v33, %v2497_v14  ;;  %v2848_v33 = vld [vmem:[#allocation5 + $0x16c] sm:$0xf] }
 0x1b9   :  { %1323 = vmatpush.bf16.msrb.mxu2 %v2406_v50  ;;  %v2193_v50 = vld [vmem:[#allocation3 + $0x50] sm:$0xf] }
 0x1ba   :  { %v2194_v7 = vor.u32 %v2742_v38, %v2193_v50  ;;  %v2846_v50 = vld [vmem:[#allocation5 + $0x158] sm:$0xf0]  ;;  %v2374_v38 = vor.u32 %v2787_v51, %v2373_v4  ;;  %v2701_v51 = vld [vmem:[#allocation5 + $0x210] sm:$0xf] }
 0x1bb   :  { %1353 = vmatpush.bf16.msrb.mxu0 %v2266_v42 }
 0x1bc   :  { %1289 = vmatpush.bf16.msra.mxu3 %v2342_v5  ;;  %v2158_v5 = vor.u32 %v2733_v18, %v2157_v17  ;;  %v2511_v17 = vld [vmem:[#allocation5 + $0x9c] sm:$0xf0] }
 0x1bd   :  { %1324 = vmatpush.bf16.msrb.mxu2 %v2394_v12  ;;  %v2514_v18 = vor.u32 %v2821_v48, %v2511_v17  ;;  %v2625_v48 = vld [vmem:[#allocation5 + $0x170] sm:$0xf] }
 0x1bf   :  { %1354 = vmatpush.bf16.msrb.mxu0 %v2254_v53  ;;  %v2813_v53 = vld [vmem:[#allocation5 + $0x50] sm:$0xf0] }
 0x1c0   :  { %1334 = vmatpush.bf16.msrb.mxu3 %v2242_v27  ;;  %v2521_v27 = vld [vmem:[#allocation5 + $0xa8] sm:$0xf] }
 0x1c1   :  { %1325 = vmatpush.bf16.msrb.mxu2 %v2382_v28  ;;  %v2421_v28 = vld [vmem:[#allocation3 + $0x218] sm:$0xf]  ;;  %v2522_v11 = vor.u32 %v2825_v26, %v2521_v27  ;;  %v2815_v26 = vld [vmem:[#allocation5 + $0x64] sm:$0xf] }
 0x1c2   :  { %v2422_v63 = vor.u32 %v2799_v56, %v2421_v28  ;;  %v2807_v28 = vld [vmem:[#allocation5 + $0x20] sm:$0xf0] }
 0x1c4   :  { %1335 = vmatpush.bf16.msrb.mxu3 %v2230_v34  ;;  %v2410_v34 = vor.u32 %v2796_v31, %v2409_v30  ;;  %v2437_v31 = vld [vmem:[#allocation5] sm:$0xf] }
 0x1c5   :  { %1326 = vmatpush.bf16.msrb.mxu2 %v2370_v13  ;;  %v2822_v13 = vld [vmem:[#allocation5 + $0x98] sm:$0xf0] }
 0x1c6   :  { %v2510_v0 = vor.u32 %v2822_v13, %v2509_v29  ;;  %v2487_v29 = vld [vmem:[#allocation5 + $0x6c] sm:$0xf0] }
 0x1c7   :  { %v2490_v30 = vor.u32 %v2815_v26, %v2487_v29  ;;  %v2872_v29 = vld [vmem:[#allocation5 + $0x22c] sm:$0xf] }
 0x1c8   :  { %1336 = vmatpush.bf16.msrb.mxu3 %v2218_v21  ;;  %v2816_v21 = vld [vmem:[#allocation5 + $0x68] sm:$0xf0] }
 0x1c9   :  { %1327 = vmatpush.bf16.msrb.mxu2 %v2358_v45  ;;  %v2398_v45 = vor.u32 %v2793_v24, %v2397_v37  ;;  %v2486_v49 = vor.u32 %v2816_v21, %v2485_v19  ;;  %v2619_v37 = vld [vmem:[#allocation5 + $0x174] sm:$0xf0]  ;;  %v2873_v19 = vld [vmem:[#allocation5 + $0x230] sm:$0xf0] }
 0x1ca   :  { %v2622_v24 = vor.u32 %v2848_v33, %v2619_v37  ;;  %v2809_v21 = vld [vmem:[#allocation5 + $0x34] sm:$0xf]  ;;  %v2703_v37 = vld [vmem:[#allocation5 + $0x21c] sm:$0xf0] }
 0x1cb   :  { %v2869_v33 = vld [vmem:[#allocation5 + $0x214] sm:$0xf] }
 0x1cc   :  { %1337 = vmatpush.bf16.msrb.mxu3 %v2206_v52  ;;  %v2473_v52 = vld [vmem:[#allocation5 + $0x48] sm:$0xf] }
 0x1cd   :  { %1328 = vmatpush.bf16.msrb.mxu2 %v2346_v47  ;;  %v2386_v47 = vor.u32 %v2790_v41, %v2385_v39  ;;  %v2713_v39 = vld [vmem:[#allocation5 + $0x228] sm:$0xf] }
 0x1d0   :  { %1338 = vmatpush.bf16.msrb.mxu3 %v2194_v7  ;;  %v2361_v7 = vld [vmem:[#allocation3 + $0x1a0] sm:$0xf] }
 0x1d4   :  { %1339 = vmatpush.bf16.msrb.mxu3 %v2182_v59  ;;  %v2810_v59 = vld [vmem:[#allocation5 + $0x38] sm:$0xf0] }
 0x1d8   :  { %1340 = vmatpush.bf16.msrb.mxu3 %v2170_v43  ;;  %v2523_v43 = vld [vmem:[#allocation5 + $0xb4] sm:$0xf0] }
 0x1dc   :  { %1341 = vmatpush.bf16.msrb.mxu3 %v2158_v5  ;;  %v2818_v5 = vld [vmem:[#allocation5 + $0x7c] sm:$0xf] }
 0x21c   :  { %v745_v54 = vpop.f32.mrf.mxu0 }
 0x21d   :  { %v746_v55 = vadd.f32 %v745_v54, %v682_v35  ;;  %v2617_v35 = vld [vmem:[#allocation5 + $0x168] sm:$0xf] }
 0x21e   :  { %v2618_v54 = vor.u32 %v2849_v40, %v2617_v35  ;;  %v2714_v35 = vor.u32 %v2873_v19, %v2713_v39  ;;  %v2844_v39 = vld [vmem:[#allocation5 + $0x148] sm:$0xf0]  ;;  %v2653_v19 = vld [vmem:[#allocation5 + $0x1b0] sm:$0xf] }
 0x21f   :  { %2886 = vtanh.f32 %v746_v55  ;;  %v2605_v55 = vld [vmem:[#allocation5 + $0x150] sm:$0xf] }
 0x222   :  { %v732_v60 = vpop.f32.mrf.mxu3 }
 0x223   :  { %v733_v61 = vadd.f32 %v732_v60, %v681_v57  ;;  %v2474_v57 = vor.u32 %v2813_v53, %v2473_v52  ;;  %v2606_v60 = vor.u32 %v2846_v50, %v2605_v55  ;;  %v2870_v52 = vld [vmem:[#allocation5 + $0x218] sm:$0xf0]  ;;  %v2451_v50 = vld [vmem:[#allocation5 + $0x24] sm:$0xf0] }
 0x224   :  { %v747_v62 = vpop.f32.mrf.mxu0  ;;  %v2806_v55 = vld [vmem:[#allocation5 + $0x1c] sm:$0xf] }
 0x225   :  { %v2887_v12 = vpop.eup %2886  ;;  %2888 = vtanh.f32 %v733_v61  ;;  %v2362_v61 = vor.u32 %v2784_v58, %v2361_v7  ;;  %v2462_v62 = vor.u32 %v2810_v59, %v2461_v6  ;;  %v2454_v7 = vor.u32 %v2806_v55, %v2451_v50  ;;  %v2545_v6 = vld [vmem:[#allocation5 + $0xd8] sm:$0xf]  ;;  %v2831_v59 = vld [vmem:[#allocation5 + $0xe0] sm:$0xf0] }
 0x226   :  { %v3548_v15 = vpack.c.bf16 %v2887_v12, %v2887_v12  ;;  %v2824_v12 = vld [vmem:[#allocation5 + $0xac] sm:$0xf]  ;;  %v2641_v55 = vld [vmem:[#allocation5 + $0x198] sm:$0xf]  ;;  %v2855_v50 = vld [vmem:[#allocation5 + $0x1a0] sm:$0xf0] }
 0x227   :  { %v2526_v16 = vor.u32 %v2824_v12, %v2523_v43 }
 0x228   :  { %1277 = vmatmul.bf16.vlgmr.msra.gmra.mxu2 %v3548_v15 }
 0x229   :  { %1867 = vmatpush.bf16.msra.mxu2 %v2522_v11  ;;  %v2804_v11 = vld [vmem:[#allocation5 + $0x8] sm:$0xf0] }
 0x22a   :  { %v734_v22 = vpop.f32.mrf.mxu3  ;;  %v2438_v13 = vor.u32 %v2804_v11, %v2437_v31  ;;  %v2613_v31 = vld [vmem:[#allocation5 + $0x158] sm:$0xf] }
 0x22b   :  { %v2889_v23 = vpop.eup %2888  ;;  %v2499_v22 = vld [vmem:[#allocation5 + $0x84] sm:$0xf0] }
 0x22c   :  { %v3551_v25 = vpack.c.bf16 %v2889_v23, %v2889_v23  ;;  %v2502_v23 = vor.u32 %v2818_v5, %v2499_v22  ;;  %v2533_v22 = vld [vmem:[#allocation5 + $0xc0] sm:$0xf] }
 0x22d   :  { %1868 = vmatpush.bf16.msra.mxu2 %v2510_v0  ;;  %v2812_v0 = vld [vmem:[#allocation5 + $0x4c] sm:$0xf] }
 0x22e   :  { %1264 = vmatmul.bf16.vlgmr.msra.gmra.mxu1 %v3551_v25  ;;  %1303 = vmatmul.bf16.vlgmr.msra.gmra.mxu0 %v3551_v25 }
 0x22f   :  { %1360 = vmatpush.bf16.msra.mxu1 %v2434_v20  ;;  %v2449_v20 = vld [vmem:[#allocation5 + $0x18] sm:$0xf]  ;;  %1893 = vmatpush.bf16.msra.mxu0 %v2714_v35 }
 0x230   :  { %v2450_v56 = vor.u32 %v2807_v28, %v2449_v20  ;;  %v2677_v20 = vld [vmem:[#allocation5 + $0x1e0] sm:$0xf] }
 0x231   :  { %1869 = vmatpush.bf16.msra.mxu2 %v2498_v36  ;;  %v2569_v36 = vld [vmem:[#allocation5 + $0x108] sm:$0xf] }
 0x232   :  { %v758_v1 = vpop.f32.mrf.mxu3 }
 0x233   :  { %v759_v32 = vadd.f32 %v758_v1, %v683_v8  ;;  %1361 = vmatpush.bf16.msra.mxu1 %v2422_v63  ;;  %v2593_v8 = vld [vmem:[#allocation5 + $0x138] sm:$0xf]  ;;  %v2843_v63 = vld [vmem:[#allocation5 + $0x140] sm:$0xf0]  ;;  %v2840_v1 = vld [vmem:[#allocation5 + $0x128] sm:$0xf0] }
 0x234   :  { %v2594_v27 = vor.u32 %v2843_v63, %v2593_v8  ;;  %v2836_v8 = vld [vmem:[#allocation5 + $0x10c] sm:$0xf]  ;;  %v2571_v63 = vld [vmem:[#allocation5 + $0x114] sm:$0xf0] }
 0x235   :  { %2890 = vtanh.f32 %v759_v32  ;;  %1870 = vmatpush.bf16.msra.mxu2 %v2486_v49  ;;  %v2475_v32 = vld [vmem:[#allocation5 + $0x54] sm:$0xf0]  ;;  %v2834_v49 = vld [vmem:[#allocation5 + $0xf8] sm:$0xf0]  ;;  %v2574_v26 = vor.u32 %v2836_v8, %v2571_v63 }
 0x236   :  { %v2478_v14 = vor.u32 %v2812_v0, %v2475_v32  ;;  %v2861_v0 = vld [vmem:[#allocation5 + $0x1d0] sm:$0xf0] }
 0x237   :  { %1362 = vmatpush.bf16.msra.mxu1 %v2410_v34  ;;  %v2833_v32 = vld [vmem:[#allocation5 + $0xf4] sm:$0xf] }
 0x239   :  { %1871 = vmatpush.bf16.msra.mxu2 %v2474_v57  ;;  %v2595_v57 = vld [vmem:[#allocation5 + $0x144] sm:$0xf0] }
 0x23a   :  { %v760_v42 = vpop.f32.mrf.mxu3 }
 0x23b   :  { %v2891_v44 = vpop.eup %2890  ;;  %1363 = vmatpush.bf16.msra.mxu1 %v2398_v45  ;;  %v2837_v45 = vld [vmem:[#allocation5 + $0x110] sm:$0xf0]  ;;  %v2463_v42 = vld [vmem:[#allocation5 + $0x3c] sm:$0xf0] }
 0x23c   :  { %v767_v46 = vpack.c.bf16 %v2891_v44, %v2891_v44  ;;  %v2570_v41 = vor.u32 %v2837_v45, %v2569_v36  ;;  %v2466_v40 = vor.u32 %v2809_v21, %v2463_v42  ;;  %v2845_v44 = vld [vmem:[#allocation5 + $0x154] sm:$0xf]  ;;  %v2706_v36 = vor.u32 %v2869_v33, %v2703_v37  ;;  %v2601_v45 = vld [vmem:[#allocation5 + $0x140] sm:$0xf]  ;;  %v2858_v21 = vld [vmem:[#allocation5 + $0x1b8] sm:$0xf0] }
 0x23d   :  { %1872 = vmatpush.bf16.msra.mxu2 %v2462_v62  ;;  %v2867_v62 = vld [vmem:[#allocation5 + $0x200] sm:$0xf0]  ;;  %v2830_v42 = vld [vmem:[#allocation5 + $0xdc] sm:$0xf]  ;;  %v2654_v35 = vor.u32 %v2858_v21, %v2653_v19  ;;  %v2505_v33 = vld [vmem:[#allocation5 + $0x80] sm:$0xf] }
 0x23e   :  { %1290 = vmatmul.bf16.vlgmr.msra.gmra.mxu3 %v767_v46  ;;  %1316 = vmatmul.bf16.vlgmr.msrb.gmra.mxu1 %v3548_v15 }
 0x23f   :  { %1329 = vmatmul.bf16.vlgmr.msrb.gmra.mxu2 %v767_v46  ;;  %1355 = vmatmul.bf16.vlgmr.msrb.gmra.mxu0 %v3548_v15  ;;  %v2350_v15 = vor.u32 %v2781_v3, %v2349_v10  ;;  %v2803_v10 = vld [vmem:[#allocation5 + $0x4] sm:$0xf]  ;;  %v2439_v3 = vld [vmem:[#allocation5 + $0xc] sm:$0xf0] }
 0x240   :  { %1364 = vmatpush.bf16.msra.mxu1 %v2386_v47  ;;  %1880 = vmatpush.bf16.msra.mxu3 %v2618_v54  ;;  %v2557_v47 = vld [vmem:[#allocation5 + $0xf0] sm:$0xf]  ;;  %v2702_v54 = vor.u32 %v2870_v52, %v2701_v51  ;;  %v2442_v43 = vor.u32 %v2803_v10, %v2439_v3  ;;  %v2841_v51 = vld [vmem:[#allocation5 + $0x130] sm:$0xf0]  ;;  %v2838_v10 = vld [vmem:[#allocation5 + $0x118] sm:$0xf0] }
 0x241   :  { %1873 = vmatpush.bf16.msra.mxu2 %v2450_v56  ;;  %v2558_v53 = vor.u32 %v2834_v49, %v2557_v47  ;;  %v2864_v56 = vld [vmem:[#allocation5 + $0x1e8] sm:$0xf0]  ;;  %v2589_v49 = vld [vmem:[#allocation5 + $0x128] sm:$0xf] }
 0x242   :  { %1894 = vmatpush.bf16.msra.mxu0 %v2702_v54  ;;  %v2590_v52 = vor.u32 %v2841_v51, %v2589_v49 }
 0x244   :  { %1365 = vmatpush.bf16.msra.mxu1 %v2374_v38  ;;  %1881 = vmatpush.bf16.msra.mxu3 %v2606_v60  ;;  %v2842_v38 = vld [vmem:[#allocation5 + $0x13c] sm:$0xf]  ;;  %v2689_v60 = vld [vmem:[#allocation5 + $0x1f8] sm:$0xf] }
 0x245   :  { %1874 = vmatpush.bf16.msra.mxu2 %v2438_v13  ;;  %v2598_v58 = vor.u32 %v2842_v38, %v2595_v57  ;;  %v2690_v12 = vor.u32 %v2867_v62, %v2689_v60  ;;  %v2827_v38 = vld [vmem:[#allocation5 + $0xc4] sm:$0xf]  ;;  %v2642_v57 = vor.u32 %v2855_v50, %v2641_v55  ;;  %v2577_v62 = vld [vmem:[#allocation5 + $0x110] sm:$0xf]  ;;  %v2814_v50 = vld [vmem:[#allocation5 + $0x58] sm:$0xf0] }
 0x246   :  { %v2578_v3 = vor.u32 %v2838_v10, %v2577_v62  ;;  %v2481_v55 = vld [vmem:[#allocation5 + $0x50] sm:$0xf] }
 0x247   :  { %1895 = vmatpush.bf16.msra.mxu0 %v2690_v12  ;;  %v2629_v12 = vld [vmem:[#allocation5 + $0x180] sm:$0xf] }
 0x248   :  { %1366 = vmatpush.bf16.msra.mxu1 %v2362_v61  ;;  %1882 = vmatpush.bf16.msra.mxu3 %v2594_v27  ;;  %v2546_v61 = vor.u32 %v2831_v59, %v2545_v6  ;;  %v2678_v27 = vor.u32 %v2864_v56, %v2677_v20  ;;  %v2863_v6 = vld [vmem:[#allocation5 + $0x1e4] sm:$0xf]  ;;  %v2679_v59 = vld [vmem:[#allocation5 + $0x1ec] sm:$0xf0]  ;;  %v3568_v56 = vld [vmem:[%s3606_s7] sm:$0x7] }
 0x249   :  { %1919 = vmatpush.bf16.msrb.mxu2 %v2622_v24  ;;  %v867_v19 = vperm.slane %v3568_v56, 1 }
 0x24b   :  { %1896 = vmatpush.bf16.msra.mxu0 %v2678_v27 }
 0x24c   :  { %1367 = vmatpush.bf16.msra.mxu1 %v2350_v15  ;;  %v2839_v15 = vld [vmem:[#allocation5 + $0x124] sm:$0xf] }
 0x24e   :  { %1342 = vmatmul.bf16.vlgmr.msrb.gmra.mxu3 %v3551_v25  ;;  %v2581_v25 = vld [vmem:[#allocation5 + $0x120] sm:$0xf] }
 0x24f   :  { %1368 = vmatmul.bf16.vlgmr.msra.gmra.mxu1 %v767_v46  ;;  %v2582_v34 = vor.u32 %v2840_v1, %v2581_v25  ;;  %v2607_v46 = vld [vmem:[#allocation5 + $0x15c] sm:$0xf0]  ;;  %v2847_v25 = vld [vmem:[#allocation5 + $0x160] sm:$0xf0]  ;;  %v2665_v1 = vld [vmem:[#allocation5 + $0x1c8] sm:$0xf] }
 0x250   :  { %1906 = vmatpush.bf16.msrb.mxu1 %v2526_v16  ;;  %v2610_v4 = vor.u32 %v2845_v44, %v2607_v46  ;;  %v2583_v16 = vld [vmem:[#allocation5 + $0x12c] sm:$0xf0]  ;;  %v2614_v13 = vor.u32 %v2847_v25, %v2613_v31  ;;  %v2866_v44 = vld [vmem:[#allocation5 + $0x1fc] sm:$0xf]  ;;  %v2691_v46 = vld [vmem:[#allocation5 + $0x204] sm:$0xf0] }
 0x251   :  { %1883 = vmatpush.bf16.msra.mxu3 %v2582_v34  ;;  %v2586_v17 = vor.u32 %v2839_v15, %v2583_v16  ;;  %v2666_v34 = vor.u32 %v2861_v0, %v2665_v1  ;;  %v2860_v16 = vld [vmem:[#allocation5 + $0x1cc] sm:$0xf]  ;;  %v2553_v25 = vld [vmem:[#allocation5 + $0xe0] sm:$0xf] }
 0x252   :  { %1920 = vmatpush.bf16.msrb.mxu2 %v2610_v4  ;;  %v2694_v4 = vor.u32 %v2866_v44, %v2691_v46  ;;  %v2631_v44 = vld [vmem:[#allocation5 + $0x18c] sm:$0xf0]  ;;  %v2493_v46 = vld [vmem:[#allocation5 + $0x68] sm:$0xf] }
 0x253   :  { %1897 = vmatpush.bf16.msra.mxu0 %v2666_v34  ;;  %v2854_v34 = vld [vmem:[#allocation5 + $0x19c] sm:$0xf] }
 0x254   :  { %1907 = vmatpush.bf16.msrb.mxu1 %v2514_v18  ;;  %v2850_v18 = vld [vmem:[#allocation5 + $0x178] sm:$0xf0] }
 0x255   :  { %1884 = vmatpush.bf16.msra.mxu3 %v2570_v41  ;;  %v2626_v5 = vor.u32 %v2850_v18, %v2625_v48  ;;  %v2602_v41 = vor.u32 %v2844_v39, %v2601_v45  ;;  %v2667_v48 = vld [vmem:[#allocation5 + $0x1d4] sm:$0xf0]  ;;  %v2829_v45 = vld [vmem:[#allocation5 + $0xd0] sm:$0xf0] }
 0x256   :  { %1921 = vmatpush.bf16.msrb.mxu2 %v2598_v58  ;;  %v2535_v58 = vld [vmem:[#allocation5 + $0xcc] sm:$0xf0]  ;;  %v2670_v18 = vor.u32 %v2860_v16, %v2667_v48 }
 0x257   :  { %1898 = vmatpush.bf16.msra.mxu0 %v2654_v35  ;;  %v2538_v60 = vor.u32 %v2827_v38, %v2535_v58 }
 0x258   :  { %1908 = vmatpush.bf16.msrb.mxu1 %v2502_v23  ;;  %v2828_v23 = vld [vmem:[#allocation5 + $0xc8] sm:$0xf0] }
 0x259   :  { %1885 = vmatpush.bf16.msra.mxu3 %v2558_v53  ;;  %v2534_v28 = vor.u32 %v2828_v23, %v2533_v22  ;;  %v2565_v22 = vld [vmem:[#allocation5 + $0xf8] sm:$0xf]  ;;  %v2835_v23 = vld [vmem:[#allocation5 + $0x100] sm:$0xf0] }
 0x25a   :  { %1922 = vmatpush.bf16.msrb.mxu2 %v2586_v17  ;;  %v2529_v17 = vld [vmem:[#allocation5 + $0xb0] sm:$0xf] }
 0x25b   :  { %1899 = vmatpush.bf16.msra.mxu0 %v2642_v57  ;;  %v2482_v57 = vor.u32 %v2814_v50, %v2481_v55 }
 0x25c   :  { %1909 = vmatpush.bf16.msrb.mxu1 %v2490_v30  ;;  %v2715_v30 = vld [vmem:[#allocation5 + $0x234] sm:$0xf0] }
 0x25d   :  { %1886 = vmatpush.bf16.msra.mxu3 %v2546_v61  ;;  %v2718_v11 = vor.u32 %v2872_v29, %v2715_v30  ;;  %v2682_v61 = vor.u32 %v2863_v6, %v2679_v59  ;;  %v2655_v29 = vld [vmem:[#allocation5 + $0x1bc] sm:$0xf0]  ;;  %v2517_v30 = vld [vmem:[#allocation5 + $0x98] sm:$0xf] }
 0x25e   :  { %1923 = vmatpush.bf16.msrb.mxu2 %v2574_v26  ;;  %v2857_v26 = vld [vmem:[#allocation5 + $0x1b4] sm:$0xf]  ;;  %v2469_v59 = vld [vmem:[#allocation5 + $0x38] sm:$0xf] }
 0x25f   :  { %v2658_v31 = vor.u32 %v2857_v26, %v2655_v29  ;;  %v868_v29 = vperm.slane %v3568_v56, 2 }
 0x260   :  { %1910 = vmatpush.bf16.msrb.mxu1 %v2478_v14  ;;  %v2559_v14 = vld [vmem:[#allocation5 + $0xfc] sm:$0xf0] }
 0x261   :  { %1887 = vmatpush.bf16.msra.mxu3 %v2534_v28  ;;  %v2562_v24 = vor.u32 %v2833_v32, %v2559_v14  ;;  %v2566_v28 = vor.u32 %v2835_v23, %v2565_v22  ;;  %v866_v32 = vperm.slane %v3568_v56, 0  ;;  %v2643_v14 = vld [vmem:[#allocation5 + $0x1a4] sm:$0xf0]  ;;  %v2709_v23 = vld [vmem:[#allocation5 + $0x218] sm:$0xf] }
 0x262   :  { %v2646_v37 = vor.u32 %v2854_v34, %v2643_v14 }
 0x263   :  { %1924 = vmatpush.bf16.msrb.mxu2 %v2562_v24  ;;  %v2820_v24 = vld [vmem:[#allocation5 + $0x88] sm:$0xf0] }
 0x264   :  { %1911 = vmatpush.bf16.msrb.mxu1 %v2466_v40  ;;  %v2547_v40 = vld [vmem:[#allocation5 + $0xe4] sm:$0xf0]  ;;  %v2506_v39 = vor.u32 %v2820_v24, %v2505_v33  ;;  %v2673_v24 = vld [vmem:[#allocation5 + $0x1d0] sm:$0xf] }
 0x265   :  { %1932 = vmatpush.bf16.msrb.mxu3 %v2718_v11  ;;  %v2550_v47 = vor.u32 %v2830_v42, %v2547_v40  ;;  %v2823_v11 = vld [vmem:[#allocation5 + $0xa0] sm:$0xf0] }
 0x266   :  { %v2518_v1 = vor.u32 %v2823_v11, %v2517_v30  ;;  %v2851_v40 = vld [vmem:[#allocation5 + $0x184] sm:$0xf]  ;;  %v2868_v11 = vld [vmem:[#allocation5 + $0x208] sm:$0xf0] }
 0x267   :  { %1925 = vmatpush.bf16.msrb.mxu2 %v2550_v47  ;;  %v2634_v47 = vor.u32 %v2851_v40, %v2631_v44  ;;  %v2649_v40 = vld [vmem:[#allocation5 + $0x1a0] sm:$0xf] }
 0x268   :  { %1912 = vmatpush.bf16.msrb.mxu1 %v2454_v7 }
 0x269   :  { %1933 = vmatpush.bf16.msrb.mxu3 %v2706_v36  ;;  %v2541_v36 = vld [vmem:[#allocation5 + $0xc8] sm:$0xf] }
 0x26b   :  { %1926 = vmatpush.bf16.msrb.mxu2 %v2538_v60  ;;  %v2811_v60 = vld [vmem:[#allocation5 + $0x40] sm:$0xf0] }
 0x26c   :  { %1913 = vmatpush.bf16.msrb.mxu1 %v2442_v43  ;;  %v2852_v43 = vld [vmem:[#allocation5 + $0x188] sm:$0xf0] }
 0x26d   :  { %1934 = vmatpush.bf16.msrb.mxu3 %v2694_v4  ;;  %v2630_v15 = vor.u32 %v2852_v43, %v2629_v12  ;;  %v2817_v4 = vld [vmem:[#allocation5 + $0x70] sm:$0xf0]  ;;  %v2721_v12 = vld [vmem:[#allocation5 + $0x230] sm:$0xf]  ;;  %v2874_v43 = vld [vmem:[#allocation5 + $0x238] sm:$0xf0] }
 0x26e   :  { %v2494_v49 = vor.u32 %v2817_v4, %v2493_v46  ;;  %v2637_v46 = vld [vmem:[#allocation5 + $0x188] sm:$0xf] }
 0x26f   :  { %1900 = vmatpush.bf16.msra.mxu0 %v2630_v15 }
 0x270   :  { %1958 = vmatpush.bf16.msra.mxu1 %v2626_v5  ;;  %v2826_v5 = vld [vmem:[#allocation5 + $0xb8] sm:$0xf0] }
 0x271   :  { %1935 = vmatpush.bf16.msrb.mxu3 %v2682_v61  ;;  %v2530_v20 = vor.u32 %v2826_v5, %v2529_v17 }
 0x273   :  { %1945 = vmatpush.bf16.msrb.mxu0 %v2530_v20  ;;  %v2871_v20 = vld [vmem:[#allocation5 + $0x220] sm:$0xf0] }
 0x274   :  { %1959 = vmatpush.bf16.msra.mxu1 %v2614_v13  ;;  %v2832_v13 = vld [vmem:[#allocation5 + $0xe8] sm:$0xf0]  ;;  %v2710_v30 = vor.u32 %v2871_v20, %v2709_v23 }
 0x275   :  { %1936 = vmatpush.bf16.msrb.mxu3 %v2670_v18  ;;  %v2554_v0 = vor.u32 %v2832_v13, %v2553_v25  ;;  %v2722_v18 = vor.u32 %v2874_v43, %v2721_v12 }
 0x277   :  { %1946 = vmatpush.bf16.msrb.mxu0 %v2518_v1 }
 0x278   :  { %1960 = vmatpush.bf16.msra.mxu1 %v2602_v41  ;;  %v2542_v41 = vor.u32 %v2829_v45, %v2541_v36  ;;  %v2862_v36 = vld [vmem:[#allocation5 + $0x1d8] sm:$0xf0] }
 0x279   :  { %1937 = vmatpush.bf16.msrb.mxu3 %v2658_v31  ;;  %v2697_v31 = vld [vmem:[#allocation5 + $0x200] sm:$0xf]  ;;  %v2674_v45 = vor.u32 %v2862_v36, %v2673_v24 }
 0x27a   :  { %v2698_v1 = vor.u32 %v2868_v11, %v2697_v31 }
 0x27b   :  { %1947 = vmatpush.bf16.msrb.mxu0 %v2506_v39  ;;  %v2661_v39 = vld [vmem:[#allocation5 + $0x1b8] sm:$0xf] }
 0x27c   :  { %1961 = vmatpush.bf16.msra.mxu1 %v2590_v52 }
 0x27d   :  { %1938 = vmatpush.bf16.msrb.mxu3 %v2646_v37 }
 0x27f   :  { %1948 = vmatpush.bf16.msrb.mxu0 %v2494_v49 }
 0x280   :  { %1962 = vmatpush.bf16.msra.mxu1 %v2578_v3  ;;  %v2470_v3 = vor.u32 %v2811_v60, %v2469_v59 }
 0x281   :  { %1939 = vmatpush.bf16.msrb.mxu3 %v2634_v47  ;;  %v2853_v47 = vld [vmem:[#allocation5 + $0x190] sm:$0xf0] }
 0x282   :  { %v2638_v4 = vor.u32 %v2853_v47, %v2637_v46 }
 0x283   :  { %1949 = vmatpush.bf16.msrb.mxu0 %v2482_v57 }
 0x284   :  { %1963 = vmatpush.bf16.msra.mxu1 %v2566_v28 }
 0x287   :  { %1950 = vmatpush.bf16.msrb.mxu0 %v2470_v3 }
 0x288   :  { %1964 = vmatpush.bf16.msra.mxu1 %v2554_v0  ;;  %v2685_v0 = vld [vmem:[#allocation5 + $0x1e8] sm:$0xf] }
 0x28c   :  { %1965 = vmatpush.bf16.msra.mxu1 %v2542_v41  ;;  %v2859_v41 = vld [vmem:[#allocation5 + $0x1c0] sm:$0xf0] }
 0x2ab   :  { %v3559_v53 = vpop.f32.mrf.mxu1  ;;  %v3561_v54 = vpop.f32.mrf.mxu2 }
 0x2ac   :  { %v3563_v7 = vpop.f32.mrf.mxu0  ;;  %v1266_v42 = vadd.f32 %v3559_v53, %v866_v32  ;;  %v2865_v32 = vld [vmem:[#allocation5 + $0x1f0] sm:$0xf0] }
 0x2ad   :  { %v1305_v51 = vadd.f32 %v3563_v7, %v867_v19  ;;  %v2457_v7 = vld [vmem:[#allocation5 + $0x20] sm:$0xf]  ;;  %v2686_v37 = vor.u32 %v2865_v32, %v2685_v0 }
 0x2ae   :  { %v1279_v52 = vadd.f32 %v3561_v54, %v1266_v42  ;;  %v2808_v54 = vld [vmem:[#allocation5 + $0x28] sm:$0xf0] }
 0x2af   :  { %v2458_v15 = vor.u32 %v2808_v54, %v2457_v7 }
 0x2b1   :  { %1951 = vmatpush.bf16.msrb.mxu0 %v2458_v15 }
 0x2b3   :  { %v1267_v8 = vpop.f32.mrf.mxu1  ;;  %v1280_v63 = vpop.f32.mrf.mxu2 }
 0x2b4   :  { %v1306_v27 = vpop.f32.mrf.mxu0  ;;  %v2445_v63 = vld [vmem:[#allocation5 + $0x8] sm:$0xf] }
 0x2b5   :  { %v2805_v27 = vld [vmem:[#allocation5 + $0x10] sm:$0xf0] }
 0x2b6   :  { %v2446_v26 = vor.u32 %v2805_v27, %v2445_v63 }
 0x2b8   :  { %1952 = vmatpush.bf16.msrb.mxu0 %v2446_v26 }
 0x2bb   :  { %v1317_v21 = vpop.f32.mrf.mxu1 }
 0x2bc   :  { %v3573_v35 = vpop.f32.mrf.mxu0  ;;  %v1318_v53 = vadd.f32 %v1317_v21, %v1305_v51  ;;  %v2662_v21 = vor.u32 %v2859_v41, %v2661_v39 }
 0x2c1   :  { %v1291_v38 = vpop.f32.mrf.mxu3 }
 0x2c2   :  { %v1292_v58 = vadd.f32 %v1291_v38, %v1279_v52  ;;  %v1330_v6 = vpop.f32.mrf.mxu2 }
 0x2c3   :  { %v1331_v61 = vadd.f32 %v1330_v6, %v1318_v53  ;;  %v1319_v62 = vpop.f32.mrf.mxu1 }
 0x2c4   :  { %2892 = vtanh.f32 %v1292_v58  ;;  %v1358_v10 = vpop.f32.mrf.mxu0  ;;  %v1475_v58 = vld [vmem:[%s3608_s9] sm:$0x7] }
 0x2c5   :  { %2894 = vtanh.f32 %v1331_v61  ;;  %v1478_v60 = vperm.slane %v1475_v58, 1  ;;  %v1477_v61 = vperm.slane %v1475_v58, 0 }
 0x2c9   :  { %v1293_v16 = vpop.f32.mrf.mxu3 }
 0x2ca   :  { %v2893_v48 = vpop.eup %2892  ;;  %v1332_v17 = vpop.f32.mrf.mxu2  ;;  %v1479_v16 = vperm.slane %v1475_v58, 2 }
 0x2cb   :  { %v2895_v5 = vpop.eup %2894  ;;  %v1376_v22 = vpack.c.bf16 %v2893_v48, %v2893_v48 }
 0x2cc   :  { %v1377_v28 = vpack.c.bf16 %v2895_v5, %v2895_v5  ;;  %v1369_v8 = vpop.f32.mrf.mxu1 }
 0x2cd   :  { %1875 = vmatmul.bf16.vlgmr.msra.gmra.mxu2 %v1376_v22  ;;  %1914 = vmatmul.bf16.vlgmr.msrb.gmra.mxu1 %v1376_v22 }
 0x2ce   :  { %1888 = vmatmul.bf16.vlgmr.msra.gmra.mxu3 %v1377_v28  ;;  %1971 = vmatpush.bf16.msra.mxu2 %v2722_v18 }
 0x2d1   :  { %v1343_v25 = vpop.f32.mrf.mxu3 }
 0x2d2   :  { %v1344_v13 = vadd.f32 %v1343_v25, %v868_v29  ;;  %1972 = vmatpush.bf16.msra.mxu2 %v2710_v30 }
 0x2d4   :  { %v1357_v34 = vadd.f32 %v3573_v35, %v1344_v13  ;;  %v1371_v14 = vpop.f32.mrf.mxu1  ;;  %v2856_v35 = vld [vmem:[#allocation5 + $0x1a8] sm:$0xf0] }
 0x2d5   :  { %v2650_v44 = vor.u32 %v2856_v35, %v2649_v40 }
 0x2d6   :  { %v1370_v33 = vadd.f32 %v1369_v8, %v1357_v34  ;;  %1973 = vmatpush.bf16.msra.mxu2 %v2698_v1  ;;  %v2883_v34 = vld [vmem:[#allocation2] ss:$0 sm:$0xff] }
 0x2d8   :  { %2896 = vtanh.f32 %v1370_v33 }
 0x2d9   :  { %v1345_v56 = vpop.f32.mrf.mxu3 }
 0x2da   :  { %1974 = vmatpush.bf16.msra.mxu2 %v2686_v37 }
 0x2dd   :  { %1927 = vmatmul.bf16.vlgmr.msrb.gmra.mxu2 %v1377_v28  ;;  %1966 = vmatmul.bf16.vlgmr.msra.gmra.mxu1 %v1377_v28  ;;  %v1987_v28 = vld [vmem:[%s3609_s10] sm:$0x7] }
 0x2de   :  { %v2897_v19 = vpop.eup %2896  ;;  %1975 = vmatpush.bf16.msra.mxu2 %v2674_v45  ;;  %v1990_v8 = vperm.slane %v1987_v28, 1  ;;  %v1989_v26 = vperm.slane %v1987_v28, 0  ;;  %v1991_v31 = vperm.slane %v1987_v28, 2 }
 0x2df   :  { %v1378_v42 = vpack.c.bf16 %v2897_v19, %v2897_v19 }
 0x2e1   :  { %1901 = vmatmul.bf16.vlgmr.msra.gmra.mxu0 %v1378_v42  ;;  %1940 = vmatmul.bf16.vlgmr.msrb.gmra.mxu3 %v1378_v42 }
 0x2e2   :  { %1976 = vmatpush.bf16.msra.mxu2 %v2662_v21 }
 0x2e6   :  { %1977 = vmatpush.bf16.msra.mxu2 %v2650_v44 }
 0x2ea   :  { %1978 = vmatpush.bf16.msra.mxu2 %v2638_v4 }
 0x2ed   :  { %1979 = vmatmul.bf16.vlgmr.msra.gmra.mxu2 %v1378_v42 }
 0x2f1   :  { %1953 = vmatmul.bf16.vlgmr.msrb.gmra.mxu0 %v1376_v22 }
 0x34a   :  { %v1915_v49 = vpop.f32.mrf.mxu1 }
 0x34b   :  { %v1916_v3 = vadd.f32 %v1915_v49, %v1478_v60  ;;  %v2724_v60 = vsel %vm2034_vm4, 1.0, %v2968_v9 }
 0x350   :  { %v1876_v51 = vpop.f32.mrf.mxu2 }
 0x351   :  { %v1889_v52 = vpop.f32.mrf.mxu3  ;;  %v1877_v7 = vadd.f32 %v1876_v51, %v1477_v61  ;;  %v2037_v51 = vld [vmem:[%s3601_s2] sm:$0xff] }
 0x352   :  { %v1917_v55 = vpop.f32.mrf.mxu1 }
 0x353   :  { %v1890_v43 = vadd.f32 %v1889_v52, %v1877_v7 }
 0x358   :  { %v1878_v50 = vpop.f32.mrf.mxu2 }
 0x359   :  { %v1891_v53 = vpop.f32.mrf.mxu3  ;;  %v2046_v50 = vsub.f32 1.0, %v2037_v51 }
 0x35a   :  { %v1967_v38 = vpop.f32.mrf.mxu1 }
 0x35e   :  { %v1902_v57 = vpop.f32.mrf.mxu0 }
 0x35f   :  { %v1903_v17 = vadd.f32 %v1902_v57, %v1890_v43 }
 0x360   :  { %v1928_v6 = vpop.f32.mrf.mxu2 }
 0x361   :  { %v1929_v12 = vadd.f32 %v1928_v6, %v1916_v3 }
 0x362   :  { %v1969_v59 = vpop.f32.mrf.mxu1 }
 0x364   :  { %v1941_v62 = vpop.f32.mrf.mxu3 }
 0x365   :  { %v1942_v15 = vadd.f32 %v1941_v62, %v1929_v12 }
 0x366   :  { %v1904_v10 = vpop.f32.mrf.mxu0 }
 0x367   :  { %2898 = vtanh.f32 %v1942_v15 }
 0x368   :  { %v1930_v54 = vpop.f32.mrf.mxu2  ;;  %2900 = vtanh.f32 %v1903_v17 }
 0x36c   :  { %v1943_v48 = vpop.f32.mrf.mxu3 }
 0x36d   :  { %v2899_v63 = vpop.eup %2898 }
 0x36e   :  { %v1954_v18 = vpop.f32.mrf.mxu0  ;;  %v2901_v29 = vpop.eup %2900  ;;  %v1996_v11 = vmul.f32 %v2899_v63, %v1990_v8 }
 0x36f   :  { %v1955_v5 = vadd.f32 %v1954_v18, %v1479_v16  ;;  %v1995_v25 = vmul.f32 %v2901_v29, %v1989_v26 }
 0x370   :  { %v1980_v22 = vpop.f32.mrf.mxu2 }
 0x371   :  { %v1968_v23 = vadd.f32 %v1967_v38, %v1955_v5  ;;  %v1998_v0 = vadd.f32 %v1996_v11, %v1995_v25 }
 0x373   :  { %v1981_v20 = vadd.f32 %v1980_v22, %v1968_v23 }
 0x375   :  { %2902 = vtanh.f32 %v1981_v20 }
 0x376   :  { %v1956_v27 = vpop.f32.mrf.mxu0 }
 0x378   :  { %v1982_v30 = vpop.f32.mrf.mxu2 }
 0x37b   :  { %v2903_v13 = vpop.eup %2902 }
 0x37c   :  { %v1997_v1 = vmul.f32 %v2903_v13, %v1991_v31 }
 0x37e   :  { %v1999_v32 = vadd.f32 %v1998_v0, %v1997_v1 }
 0x380   :  { %2000 = vadd.xlane.f32.xlu0 %v1999_v32 }
 0x3f3   :  { %v2001_v14 = vpop.xlane.xlu0 %2000 }
 0x3f4   :  { %v2006_v33 = vadd.f32 %v2883_v34, %v2001_v14 }
 0x3f6   :  { %v2007_v37 = vsub.f32 0.0, %v2006_v33 }
 0x3f8   :  { %v2008_v24 = vmul.f32 1.442695, %v2007_v37 }
 0x3fa   :  { %2904 = vpow2.f32 %v2008_v24 }
 0x400   :  { %v2905_v36 = vpop.eup %2904 }
 0x401   :  { %v2010_v56 = vadd.f32 1.0, %v2905_v36 }
 0x403   :  { %2906 = vrcp.f32 %v2010_v56  ;;  %v2022_v19 = vand.u32 2147483648, %v2010_v56  ;;  %v2020_v42 = vand.u32 2147483647, %v2010_v56  ;;  %vm2016_vm1 = vweird.f32 %v2010_v56 }
 0x405   :  { %v2023_v35 = vor.u32 1.1754944e-38, %v2022_v19  ;;  %vm2021_vm3 = vcmp.eq.f32.partialorder %v2020_v42, 8.507059e+37 }
 0x409   :  { %v2907_v45 = vpop.eup %2906 }
 0x40a   :  { %v2012_v39 = vmul.f32 %v2907_v45, %v2010_v56  ;;  %vm2017_vm15 = vweird.f32 %v2907_v45 }
 0x40b   :  { %vm2018_vm2 = vmor %vm2016_vm1, %vm2017_vm15 }
 0x40c   :  { %v2013_v41 = vsub.f32 1.0, %v2012_v39 }
 0x40e   :  { %v2014_v21 = vmul.f32 %v2907_v45, %v2013_v41 }
 0x410   :  { %v2015_v40 = vadd.f32 %v2907_v45, %v2014_v21 }
 0x412   :  { %v2019_v44 = vsel %vm2018_vm2, %v2907_v45, %v2015_v40 }
 0x413   :  { %v2024_v46 = vsel %vm2021_vm3, %v2023_v35, %v2019_v44 }
 0x414   :  { %vm2026_vm13 = vcmp.gt.f32.partialorder %v2024_v46, 0.5  ;;  %2908 = vlog2.f32 %v2024_v46  ;;  %v2041_v47 = vsub.f32 1.0, %v2024_v46 }
 0x415   :  { %v2723_v4 = vsel %vm2026_vm13, 1.0, %v2968_v9 }
 0x416   :  { %2030 = vst.msk [vmem:[%s3611_s12] sm:$0xff] %vm2029_vm0, %v2723_v4  ;;  %2910 = vlog2.f32 %v2041_v47 }
 0x41a   :  { %v2909_v49 = vpop.eup %2908 }
 0x41b   :  { %v2039_v52 = vmul.f32 0.6931472, %v2909_v49 }
 0x41c   :  { %v2911_v55 = vpop.eup %2910 }
 0x41d   :  { %v2040_v53 = vmax.f32 %v2039_v52, -100.0  ;;  %v2043_v38 = vmul.f32 0.6931472, %v2911_v55 }
 0x41f   :  { %v2044_v57 = vmax.f32 %v2043_v38, -100.0  ;;  %v2045_v58 = vmul.f32 %v2040_v53, %v2037_v51 }
 0x421   :  { %v2047_v6 = vmul.f32 %v2046_v50, %v2044_v57 }
 0x423   :  { %v2048_v59 = vadd.f32 %v2047_v6, %v2045_v58 }
 0x425   :  { %v2049_v61 = vsub.f32 0.0, %v2048_v59 }
 0x427   :  { %v2050_v62 = vmul.f32 %v2724_v60, %v2049_v61 }
 0x429   :  { %2051 = vst.msk [vmem:[%s3612_s13] sm:$0xff] %vm2029_vm0, %v2050_v62 }
 0x42a   :  { %2060 = vsyncpa [#allocation4], 1 }
 0x42b   :  { %2061 = vsyncpa [#allocation6], 1 }

</bundles_post_ra>
